<compile_context>
chip_gen: v7x
topology: tpu7x:2x2x1
jax: 0.10.0
libtpu: 0.0.40
codegen_flags: <defaults>
</compile_context>

<pallas_src>
import jax
import jax.numpy as jnp
from jax import lax
from jax.experimental import pallas as pl
from jax.experimental.pallas import tpu as pltpu


def _round_up(a, m):
    return (a + m - 1) // m * m


# ----------------------------------------------------------------------------
# Generator kernel: row-tiled policy logits -> Gumbel-max sample index,
# greedy critic index and log-prob of the sampled choice (lane-dense outputs).
# ----------------------------------------------------------------------------
def _generator_kernel(x_ref, wpol_ref, noise_ref, smp_ref, ctc_ref, plog_ref):
    f32 = jnp.float32
    # Policy logits on the MXU: bf16 operands, f32 accumulation.
    logits = jnp.dot(x_ref[...], wpol_ref[...],
                     preferred_element_type=f32)              # (TR, K) f32
    TR, K = logits.shape

    m = jnp.max(logits, axis=-1, keepdims=True)
    logz = m + jnp.log(jnp.sum(jnp.exp(logits - m), axis=-1, keepdims=True))

    iota = lax.broadcasted_iota(jnp.int32, (TR, K), 1)

    def argmax_col(vals):                                     # (TR, 1) int32
        mx = jnp.max(vals, axis=-1, keepdims=True)
        cand = jnp.where(vals >= mx, iota, K)                 # smallest max idx
        return jnp.min(cand, axis=-1, keepdims=True)

    # Gumbel-max sampling with host-supplied noise.
    # TODO(synk): Gumbel-max replaces torch.multinomial -- same distribution,
    #             not bitwise reproducible against the original sampler.
    smp_idx = argmax_col(logits + noise_ref[...])
    ctc_idx = argmax_col(logits)                              # greedy critic

    # log p(sample) = gathered logit - logZ (no full log-softmax array).
    plog = jnp.sum(jnp.where(iota == smp_idx, logits, 0.0),
                   axis=-1, keepdims=True) - logz             # (TR, 1)

    # Lane-dense stores: transpose (TR,1) columns to (1,TR) rows (XLU slot).
    smp_ref[...] = jnp.transpose(smp_idx)
    ctc_ref[...] = jnp.transpose(ctc_idx)
    plog_ref[...] = jnp.transpose(plog)


def run_generator(x_rows_bf16, w_pol_bf16, sample_key, *, tile_rows=1024):
    """x_rows_bf16: (N, H) flattened (B*S) rows, bf16.  Returns int32 sample /
    critic indices and f32 log-prob of the sampled choice, each shape (N,)."""
    N, H = x_rows_bf16.shape
    K = w_pol_bf16.shape[1]
    TR = min(tile_rows, _round_up(N, 128))      # 128-aligned row tile
    N_pad = _round_up(N, TR)
    if N_pad != N:
        x_rows_bf16 = jnp.pad(x_rows_bf16, ((0, N_pad - N), (0, 0)))
    grid = (N_pad // TR,)

    # Host-side Gumbel noise (interpret-safe); small: N_pad x K f32.
    gumbel = jax.random.gumbel(sample_key, (N_pad, K), dtype=jnp.float32)

    smp, ctc, plog = pl.pallas_call(
        _generator_kernel,
        out_shape=(jax.ShapeDtypeStruct((1, N_pad), jnp.int32),
                   jax.ShapeDtypeStruct((1, N_pad), jnp.int32),
                   jax.ShapeDtypeStruct((1, N_pad), jnp.float32)),
        grid=grid,
        in_specs=[pl.BlockSpec((TR, H), lambda i: (i, 0)),
                  pl.BlockSpec((H, K), lambda i: (0, 0)),
                  pl.BlockSpec((TR, K), lambda i: (i, 0))],
        out_specs=(pl.BlockSpec((1, TR), lambda i: (0, i)),
                   pl.BlockSpec((1, TR), lambda i: (0, i)),
                   pl.BlockSpec((1, TR), lambda i: (0, i))),
        compiler_params=pltpu.CompilerParams(
            dimension_semantics=("parallel",)),
    )(x_rows_bf16, w_pol_bf16, gumbel)
    return smp[0, :N], ctc[0, :N], plog[0, :N]


# ----------------------------------------------------------------------------
# Parser kernel: one grid step = (pass t, batch-tile nb) with TB sequences.
# MLP dep/head projections on flattened rows, batched biaffine arc scores,
# gold-head rel scores and masked per-example cross-entropy losses.
# ----------------------------------------------------------------------------
def _parser_kernel(x_ref, arc_ref, rel_ref, mask_ref,
                   wd_ref, wh_ref, ua_ref, wrd_ref, wrh_ref, urel_ref,
                   larc_ref, lrel_ref):
    f32, bf16 = jnp.float32, jnp.bfloat16
    _, TB, S, H = x_ref.shape
    Hr = wrd_ref.shape[1]
    R = urel_ref.shape[1] // Hr
    N = TB * S

    x2 = x_ref[...].reshape(N, H)                             # (N, H) bf16
    msk = mask_ref[...]                                       # (TB, S) f32
    arcs3 = arc_ref[...][:, :, None]                          # (TB, S, 1) int32
    rels3 = rel_ref[...][:, :, None]

    def mm(a, b):                                             # MXU: bf16 in, f32 acc
        return jnp.dot(a.astype(bf16), b, preferred_element_type=f32)

    relu = lambda v: jnp.maximum(v, 0.0)
    dep = relu(mm(x2, wd_ref[...]))                           # (N, H) f32
    head = relu(mm(x2, wh_ref[...]))                          # (N, H)
    rdep = relu(mm(x2, wrd_ref[...]))                         # (N, Hr)
    rhead = relu(mm(x2, wrh_ref[...]))                        # (N, Hr)

    du = mm(dep, ua_ref[...])                                 # (N, H)

    # arc scores s[b,i,j] = du[b,i]^T head[b,j]; contract last axes of both
    # operands (batched A @ B^T) so no explicit transpose is needed.
    s_arc = lax.dot_general(du.reshape(TB, S, H).astype(bf16),
                            head.reshape(TB, S, H).astype(bf16),
                            (((2,), (2,)), ((0,), (0,))),
                            preferred_element_type=f32)       # (TB, S, S)

    cnt = jnp.maximum(jnp.sum(msk, axis=-1, keepdims=True), 1.0)   # (TB, 1)
    iota_j = lax.broadcasted_iota(jnp.int32, (TB, S, S), 2)
    oh_gold = iota_j == arcs3                                 # (TB, S, S) gold heads

    gold_arc = jnp.sum(jnp.where(oh_gold, s_arc, 0.0), axis=-1)    # (TB, S)
    # Mask padded head columns before the softmax (length-prefix mask assumed).
    s_arc = jnp.where(iota_j.astype(f32) < cnt[:, :, None], s_arc, -1e9)

    def masked_ce(scores, gold):
        m = jnp.max(scores, axis=-1, keepdims=True)
        logz = m[..., 0] + jnp.log(jnp.sum(jnp.exp(scores - m), axis=-1))
        nll = (logz - gold) * msk
        # Per-example mean over valid tokens.
        # TODO(synk): verify per-example vs. global-token-mean reduction against
        #             the pretrained BiaffineAttnParser -- it directly scales g.
        return jnp.sum(nll, axis=-1, keepdims=True) / cnt     # (TB, 1)

    larc = masked_ce(s_arc, gold_arc)

    # rel scores at gold heads: rel[b,i,r] = rdep[b,i]^T U_r rhead[b, arcs[b,i]].
    # Gold-head gather via a one-hot bf16 batched matmul.
    # TODO(synk): swap for an exact-f32 index gather (jnp.take / DMA gather)
    #             once Mosaic gather support is verified at production S.
    head_sel = lax.dot_general(oh_gold.astype(bf16),
                               rhead.reshape(TB, S, Hr).astype(bf16),
                               (((2,), (1,)), ((0,), (0,))),
                               preferred_element_type=f32)    # (TB, S, Hr)

    # Fused over all R labels: urel_ref is (Hr, R*Hr) with column r*Hr + h'.
    # rel logit = lane-sum of the per-label product -- no selector matmul.
    tmp = mm(rdep, urel_ref[...])                             # (N, R*Hr)
    rel_logits = jnp.sum(tmp.reshape(N, R, Hr) * head_sel.reshape(N, 1, Hr),
                         axis=-1).reshape(TB, S, R)           # (TB, S, R)

    iota_r = lax.broadcasted_iota(jnp.int32, (TB, S, R), 2)
    gold_rel = jnp.sum(jnp.where(iota_r == rels3, rel_logits, 0.0), axis=-1)
    lrel = masked_ce(rel_logits, gold_rel)

    # Lane-dense loss outputs.
    larc_ref[...] = larc.reshape(1, 1, 1, TB)
    lrel_ref[...] = lrel.reshape(1, 1, 1, TB)


def run_parser_pair(x_both, arcs, rels, mask, p, *, target_rows=256):
    """x_both: (2, B, S, H) bf16 -- pass 0 = sampled, pass 1 = critic.
    Returns ((larc_smp, lrel_smp), (larc_ctc, lrel_ctc)), each (B,) f32."""
    _, B, S, H = x_both.shape
    Hr = p["wrd"].shape[1]
    RHr = p["urel2d"].shape[1]

    # Batch-tile so each grid step feeds the MXU >= target_rows rows.
    TB = max(1, min(B, pl.cdiv(target_rows, S)))
    if TB < B:
        TB = _round_up(TB, 8)            # sublane-aligned (TB, S) blocks when tiling
    if TB >= B:
        TB, NB, B_pad = B, 1, B
    else:
        NB = pl.cdiv(B, TB)
        B_pad = NB * TB

    if B_pad != B:
        pb = B_pad - B
        x_both = jnp.pad(x_both, ((0, 0), (0, pb), (0, 0), (0, 0)))
        arcs = jnp.pad(arcs, ((0, pb), (0, 0)))
        rels = jnp.pad(rels, ((0, pb), (0, 0)))
        mask = jnp.pad(mask, ((0, pb), (0, 0)))

    def wspec(shape):
        return pl.BlockSpec(shape, lambda t, nb: (0, 0))

    larc, lrel = pl.pallas_call(
        _parser_kernel,
        out_shape=(jax.ShapeDtypeStruct((2, NB, 1, TB), jnp.float32),
                   jax.ShapeDtypeStruct((2, NB, 1, TB), jnp.float32)),
        grid=(2, NB),
        in_specs=[pl.BlockSpec((1, TB, S, H), lambda t, nb: (t, nb, 0, 0)),
                  pl.BlockSpec((TB, S), lambda t, nb: (nb, 0)),
                  pl.BlockSpec((TB, S), lambda t, nb: (nb, 0)),
                  pl.BlockSpec((TB, S), lambda t, nb: (nb, 0)),
                  wspec((H, H)), wspec((H, H)), wspec((H, H)),
                  wspec((H, Hr)), wspec((H, Hr)), wspec((Hr, RHr))],
        out_specs=(pl.BlockSpec((1, 1, 1, TB), lambda t, nb: (t, nb, 0, 0)),
                   pl.BlockSpec((1, 1, 1, TB), lambda t, nb: (t, nb, 0, 0))),
        compiler_params=pltpu.CompilerParams(
            dimension_semantics=("parallel", "parallel")),   # >=2 steps for v7x 2 TCs
    )(x_both, arcs.astype(jnp.int32), rels.astype(jnp.int32),
      mask.astype(jnp.float32),
      p["wd"], p["wh"], p["uarc"], p["wrd"], p["wrh"], p["urel2d"])

    larc = larc.reshape(2, B_pad)[:, :B]
    lrel = lrel.reshape(2, B_pad)[:, :B]
    return (larc[0], lrel[0]), (larc[1], lrel[1])


# ----------------------------------------------------------------------------
# Full SeqLabelObfuscator forward (REINFORCE / arcs-given branch).
# ----------------------------------------------------------------------------
def seq_label_obfuscator_forward(word, char, pos, mask, length, arcs, rels,
                                 params, keywords, tgtwords, sample_key):
    del char, length  # TODO(synk): char-CNN path of the original parser not modeled
    B, S = word.shape
    H = params["emb"].shape[1]
    R, Hr, _ = params["urel"].shape

    emb = params["emb"]
    pos_emb = params["pos_emb"][pos]                          # (B, S, H) f32
    x_in = emb[word] + pos_emb                                # (B, S, H) f32

    # --- generator: sample a target word per position (Pallas kernel) --------
    smp_idx, ctc_idx, plog = run_generator(
        x_in.reshape(B * S, H).astype(jnp.bfloat16),
        params["w_pol"].astype(jnp.bfloat16), sample_key)
    smp_idx = smp_idx.reshape(B, S)
    ctc_idx = ctc_idx.reshape(B, S)
    plog = plog.reshape(B, S)

    kw_mask = (word[..., None] == keywords[None, None, :]).any(-1)
    replace = kw_mask & (mask > 0.5)
    obf_word = jnp.where(replace, tgtwords[smp_idx], word)
    ctc_word = jnp.where(replace, tgtwords[ctc_idx], word)
    plog_eff = plog * replace.astype(jnp.float32)             # (B, S)

    # --- parser on sampled & critic obfuscations (one fused Pallas call) -----
    # One stacked embedding gather over the concatenated (tiny) id tensors --
    # no (2B,S,H)-sized concatenate between generator and parser.
    words_both = jnp.concatenate([obf_word, ctc_word], axis=0)        # (2B, S)
    x_both = (emb[words_both].reshape(2, B, S, H) + pos_emb[None]
              ).astype(jnp.bfloat16)                                  # (2, B, S, H)

    pparams = {
        "wd":   params["wd"].astype(jnp.bfloat16),
        "wh":   params["wh"].astype(jnp.bfloat16),
        "uarc": params["uarc"].astype(jnp.bfloat16),
        "wrd":  params["wrd"].astype(jnp.bfloat16),
        "wrh":  params["wrh"].astype(jnp.bfloat16),
        # urel[r, h, h'] -> urel2d[h, r*Hr + h'] for the fused rel matmul.
        "urel2d": params["urel"].transpose(1, 0, 2)
                                .reshape(Hr, R * Hr).astype(jnp.bfloat16),
    }
    (loss_smp_arc, loss_smp_rel), (loss_ctc_arc, loss_ctc_rel) = run_parser_pair(
        x_both, arcs, rels, mask, pparams)

    # --- REINFORCE combine (matches the PyTorch forward) ----------------------
    rwd_smp_arc, rwd_smp_rel = -loss_smp_arc, -loss_smp_rel
    rwd_ctc_arc, rwd_ctc_rel = -loss_ctc_arc, -loss_ctc_rel
    g = (rwd_smp_arc - rwd_ctc_arc) + (rwd_smp_rel - rwd_ctc_rel)
    g = lax.stop_gradient(g)                                  # g.detach_()
    loss = -(g * plog_eff.sum(axis=-1)).mean()
    rwd = g.mean()

    return {"loss": loss, "rwd": rwd,
            "obf_word": obf_word, "ctc_word": ctc_word,
            "plog": plog_eff, "g": g}


# ----------------------------------------------------------------------------
# Deterministic parameter construction + example run.
# ----------------------------------------------------------------------------
def init_params(key, V, P, H, K, Hr, R):
    ks = jax.random.split(key, 9)
    s = 0.1
    return {
        "emb":     s * jax.random.normal(ks[0], (V, H), jnp.float32),
        "pos_emb": s * jax.random.normal(ks[1], (P, H), jnp.float32),
        "w_pol":   s * jax.random.normal(ks[2], (H, K), jnp.float32),
        "wd":      s * jax.random.normal(ks[3], (H, H), jnp.float32),
        "wh":      s * jax.random.normal(ks[4], (H, H), jnp.float32),
        "uarc":    s * jax.random.normal(ks[5], (H, H), jnp.float32),
        "wrd":     s * jax.random.normal(ks[6], (H, Hr), jnp.float32),
        "wrh":     s * jax.random.normal(ks[7], (H, Hr), jnp.float32),
        "urel":    s * jax.random.normal(ks[8], (R, Hr, Hr), jnp.float32),
    }


if __name__ == "__main__":
    B, S, H, Hr = 2, 8, 32, 32
    V, P, K, R, CL = 64, 8, 16, 4, 4

    root = jax.random.PRNGKey(0)
    k_par, k_word, k_pos, k_arc, k_rel, k_char, k_smp = jax.random.split(root, 7)

    params = init_params(k_par, V, P, H, K, Hr, R)

    keywords = jnp.arange(0, 8, dtype=jnp.int32)              # synthetic keyword ids
    tgtwords = jnp.arange(V - K, V, dtype=jnp.int32)          # synthetic target ids

    word = jax.random.randint(k_word, (B, S), 0, V, dtype=jnp.int32)
    word = word.at[:, :3].set(jnp.array([[1, 4, 7], [2, 5, 3]], jnp.int32))  # keywords present
    char = jax.random.randint(k_char, (B, S, CL), 0, 32, dtype=jnp.int32)
    pos = jax.random.randint(k_pos, (B, S), 0, P, dtype=jnp.int32)
    length = jnp.array([S, S - 2], dtype=jnp.int32)
    mask = (jnp.arange(S)[None, :] < length[:, None]).astype(jnp.float32)
    arcs = jax.random.randint(k_arc, (B, S), 0, S, dtype=jnp.int32)
    arcs = jnp.minimum(arcs, length[:, None] - 1)             # gold heads stay in-sentence
    rels = jax.random.randint(k_rel, (B, S), 0, R, dtype=jnp.int32)

    ret = seq_label_obfuscator_forward(word, char, pos, mask, length, arcs, rels,
                                       params, keywords, tgtwords, k_smp)
    jax.block_until_ready(ret["loss"])
    jax.block_until_ready(ret["rwd"])
    jax.block_until_ready(ret["obf_word"])
    print("KERNEL_OK")
</pallas_src>

<mosaic_0001>
module attributes {stable_mosaic.version = 11 : i64} {
  func.func @_generator_kernel(%arg0: i32, %arg1: memref<128x32xbf16, #tpu.memory_space<vmem>>, %arg2: memref<32x16xbf16, #tpu.memory_space<vmem>>, %arg3: memref<128x16xf32, #tpu.memory_space<vmem>>, %arg4: memref<1x128xi32, #tpu.memory_space<vmem>>, %arg5: memref<1x128xi32, #tpu.memory_space<vmem>>, %arg6: memref<1x128xf32, #tpu.memory_space<vmem>>) attributes {dimension_semantics = [#tpu.dimension_semantics<parallel>], iteration_bounds = array<i64: 1>, scalar_prefetch = 0 : i64, scratch_operands = 0 : i64, tpu.core_type = #tpu.core_type<tc>, window_params = [{transform_indices = @transform_0, window_bounds = array<i64: 128, 32>}, {pipeline_mode = #tpu.pipeline_mode<synchronous>, transform_indices = @transform_1, window_bounds = array<i64: 32, 16>}, {transform_indices = @transform_2, window_bounds = array<i64: 128, 16>}, {transform_indices = @transform_3, window_bounds = array<i64: 1, 128>}, {transform_indices = @transform_4, window_bounds = array<i64: 1, 128>}, {transform_indices = @transform_5, window_bounds = array<i64: 1, 128>}]} {
    %c0 = arith.constant 0 : index
    %c0_0 = arith.constant 0 : index
    %0 = vector.load %arg1[%c0, %c0_0] : memref<128x32xbf16, #tpu.memory_space<vmem>>, vector<128x32xbf16>
    %c0_1 = arith.constant 0 : index
    %c0_2 = arith.constant 0 : index
    %1 = vector.load %arg2[%c0_1, %c0_2] : memref<32x16xbf16, #tpu.memory_space<vmem>>, vector<32x16xbf16>
    %cst = arith.constant dense<0.000000e+00> : vector<128x16xf32>
    %2 = tpu.matmul %0, %1, %cst {dimension_numbers = #tpu.dot_dimension_numbers<[1], [0], [0], [1], [0, 0, 1, 1], [], []>} : vector<128x32xbf16>, vector<32x16xbf16>, vector<128x16xf32> -> vector<128x16xf32>
    %cst_3 = arith.constant dense<0xFF800000> : vector<128xf32>
    %3 = vector.multi_reduction <maximumf>, %2, %cst_3 [1] : vector<128x16xf32> to vector<128xf32>
    %4 = vector.shape_cast %3 : vector<128xf32> to vector<128x1xf32>
    %5 = vector.broadcast %4 : vector<128x1xf32> to vector<128x16xf32>
    %6 = arith.subf %2, %5 : vector<128x16xf32>
    %7 = math.exp %6 : vector<128x16xf32>
    %cst_4 = arith.constant dense<0.000000e+00> : vector<128xf32>
    %8 = vector.multi_reduction <add>, %7, %cst_4 [1] : vector<128x16xf32> to vector<128xf32>
    %9 = vector.shape_cast %8 : vector<128xf32> to vector<128x1xf32>
    %10 = math.log %9 : vector<128x1xf32>
    %11 = arith.addf %4, %10 : vector<128x1xf32>
    %12 = tpu.iota {dimensions = array<i32: 1>} : vector<128x16xi32>
    %c0_5 = arith.constant 0 : index
    %c0_6 = arith.constant 0 : index
    %13 = vector.load %arg3[%c0_5, %c0_6] : memref<128x16xf32, #tpu.memory_space<vmem>>, vector<128x16xf32>
    %14 = arith.addf %2, %13 : vector<128x16xf32>
    %cst_7 = arith.constant dense<0xFF800000> : vector<128xf32>
    %15 = vector.multi_reduction <maximumf>, %14, %cst_7 [1] : vector<128x16xf32> to vector<128xf32>
    %16 = vector.shape_cast %15 : vector<128xf32> to vector<128x1xf32>
    %17 = vector.broadcast %16 : vector<128x1xf32> to vector<128x16xf32>
    %18 = arith.cmpf oge, %14, %17 : vector<128x16xf32>
    %c16_i32 = arith.constant 16 : i32
    %19 = vector.broadcast %c16_i32 : i32 to vector<128x16xi32>
    %20 = arith.select %18, %12, %19 : vector<128x16xi1>, vector<128x16xi32>
    %cst_8 = arith.constant dense<2147483647> : vector<128xi32>
    %21 = vector.multi_reduction <minsi>, %20, %cst_8 [1] : vector<128x16xi32> to vector<128xi32>
    %22 = vector.shape_cast %21 : vector<128xi32> to vector<128x1xi32>
    %cst_9 = arith.constant dense<0xFF800000> : vector<128xf32>
    %23 = vector.multi_reduction <maximumf>, %2, %cst_9 [1] : vector<128x16xf32> to vector<128xf32>
    %24 = vector.shape_cast %23 : vector<128xf32> to vector<128x1xf32>
    %25 = vector.broadcast %24 : vector<128x1xf32> to vector<128x16xf32>
    %26 = arith.cmpf oge, %2, %25 : vector<128x16xf32>
    %c16_i32_10 = arith.constant 16 : i32
    %27 = vector.broadcast %c16_i32_10 : i32 to vector<128x16xi32>
    %28 = arith.select %26, %12, %27 : vector<128x16xi1>, vector<128x16xi32>
    %cst_11 = arith.constant dense<2147483647> : vector<128xi32>
    %29 = vector.multi_reduction <minsi>, %28, %cst_11 [1] : vector<128x16xi32> to vector<128xi32>
    %30 = vector.shape_cast %29 : vector<128xi32> to vector<128x1xi32>
    %31 = vector.broadcast %22 : vector<128x1xi32> to vector<128x16xi32>
    %32 = arith.cmpi eq, %12, %31 : vector<128x16xi32>
    %cst_12 = arith.constant 0.000000e+00 : f32
    %33 = vector.broadcast %cst_12 : f32 to vector<128x16xf32>
    %34 = arith.select %32, %2, %33 : vector<128x16xi1>, vector<128x16xf32>
    %cst_13 = arith.constant dense<0.000000e+00> : vector<128xf32>
    %35 = vector.multi_reduction <add>, %34, %cst_13 [1] : vector<128x16xf32> to vector<128xf32>
    %36 = vector.shape_cast %35 : vector<128xf32> to vector<128x1xf32>
    %37 = arith.subf %36, %11 : vector<128x1xf32>
    %38 = tpu.transpose %22, [1, 0] : vector<128x1xi32> -> vector<1x128xi32>
    %c0_14 = arith.constant 0 : index
    %c0_15 = arith.constant 0 : index
    %39 = vector.load %arg4[%c0_14, %c0_15] : memref<1x128xi32, #tpu.memory_space<vmem>>, vector<1x128xi32>
    tpu.vector_store %arg4[%c0_14, %c0_15], %38 {strides = array<i32>} : memref<1x128xi32, #tpu.memory_space<vmem>>, vector<1x128xi32>,
    %40 = tpu.transpose %30, [1, 0] : vector<128x1xi32> -> vector<1x128xi32>
    %c0_16 = arith.constant 0 : index
    %c0_17 = arith.constant 0 : index
    %41 = vector.load %arg5[%c0_16, %c0_17] : memref<1x128xi32, #tpu.memory_space<vmem>>, vector<1x128xi32>
    tpu.vector_store %arg5[%c0_16, %c0_17], %40 {strides = array<i32>} : memref<1x128xi32, #tpu.memory_space<vmem>>, vector<1x128xi32>,
    %42 = tpu.transpose %37, [1, 0] : vector<128x1xf32> -> vector<1x128xf32>
    %c0_18 = arith.constant 0 : index
    %c0_19 = arith.constant 0 : index
    %43 = vector.load %arg6[%c0_18, %c0_19] : memref<1x128xf32, #tpu.memory_space<vmem>>, vector<1x128xf32>
    tpu.vector_store %arg6[%c0_18, %c0_19], %42 {strides = array<i32>} : memref<1x128xf32, #tpu.memory_space<vmem>>, vector<1x128xf32>,
    return
  }
  func.func @transform_0(%arg0: i32) -> (i32, i32) {
    %c0_i32 = arith.constant 0 : i32
    %c0_i32_0 = arith.constant 0 : i32
    return %arg0, %c0_i32 : i32, i32
  }
  func.func @transform_1(%arg0: i32) -> (i32, i32) {
    %c0_i32 = arith.constant 0 : i32
    %c0_i32_0 = arith.constant 0 : i32
    %c0_i32_1 = arith.constant 0 : i32
    return %c0_i32, %c0_i32_0 : i32, i32
  }
  func.func @transform_2(%arg0: i32) -> (i32, i32) {
    %c0_i32 = arith.constant 0 : i32
    %c0_i32_0 = arith.constant 0 : i32
    return %arg0, %c0_i32 : i32, i32
  }
  func.func @transform_3(%arg0: i32) -> (i32, i32) {
    %c0_i32 = arith.constant 0 : i32
    %c0_i32_0 = arith.constant 0 : i32
    return %c0_i32, %arg0 : i32, i32
  }
  func.func @transform_4(%arg0: i32) -> (i32, i32) {
    %c0_i32 = arith.constant 0 : i32
    %c0_i32_0 = arith.constant 0 : i32
    return %c0_i32, %arg0 : i32, i32
  }
  func.func @transform_5(%arg0: i32) -> (i32, i32) {
    %c0_i32 = arith.constant 0 : i32
    %c0_i32_0 = arith.constant 0 : i32
    return %c0_i32, %arg0 : i32, i32
  }
}

</mosaic_0001>

<bundles_post_ra>
// kernel: tpu_custom_call.1
= control target key start
LH: loop header
LB: loop body
LE: loop exit
PB: predicated region body
PF: predicated region fallthrough
CT: control target
= control target key end

     0   :  { %11 = vsyncpa [#allocation3], 0  ;;  %vm92_vm0 = vcmask 261120   ;;  %s2595_s0 = inlined_call_operand.vmem [shape: bf16[128,32], index: 0, kind: input, shape index: {}]   ;;  %s2596_s1 = inlined_call_operand.vmem [shape: bf16[32,16], index: 1, kind: input, shape index: {}]   ;;  %s2597_s2 = inlined_call_operand.vmem [shape: f32[128,16], index: 2, kind: input, shape index: {}]   ;;  %s2598_s3 = inlined_call_operand.hbm [shape: s32[1,128], index: 3, kind: output, shape index: {0}]   ;;  %s2599_s4 = inlined_call_operand.hbm [shape: s32[1,128], index: 4, kind: output, shape index: {1}]   ;;  %s2600_s5 = inlined_call_operand.hbm [shape: f32[1,128], index: 5, kind: output, shape index: {2}]  }
   0x1   :  { %v1324_v0 = vld [vmem:[%s2596_s1] sm:$0xff]   ;;  %v1325_v1 = vld [vmem:[%s2596_s1 + $0x8] sm:$0xff]   ;;  %v1330_v6 = vld [vmem:[%s2595_s0 + $0x10] sm:$0xff]  }
   0x2   :  { %1297 = vmatprep.subr.bf16.mxu0 %v1324_v0  ;;  %1317 = vmatprep.subr.bf16.mxu1 %v1324_v0  ;;  %v1326_v2 = vld [vmem:[%s2595_s0] sm:$0xff]   ;;  %v1327_v4 = vld [vmem:[%s2595_s0 + $0x8] sm:$0xff]   ;;  %v1332_v7 = vld [vmem:[%s2595_s0 + $0x30] sm:$0xff]  }
   0x3   :  { %1298 = vmatpush3.bf16.msra.mxu0 %v1324_v0  ;;  %1319 = vmatpush3.bf16.msra.mxu1 %v1324_v0  ;;  %v1328_v3 = vld [vmem:[%s2595_s0 + $0x20] sm:$0xff]   ;;  %v1329_v5 = vld [vmem:[%s2595_s0 + $0x28] sm:$0xff]  }
   0x4   :  { %1299 = vmatprep.subr.bf16.mxu0 %v1325_v1  ;;  %1318 = vmatprep.subr.bf16.mxu1 %v1325_v1 }
   0x5   :  { %1301 = vmatprep.mubr.msk.bf16.mxu0 %vm92_vm0, %v1326_v2  ;;  %1309 = vmatprep.mubr.msk.bf16.mxu1 %vm92_vm0, %v1328_v3 }
   0x7   :  { %1300 = vmatpush3.bf16.msra.mxu0 %v1325_v1  ;;  %1320 = vmatpush3.bf16.msra.mxu1 %v1325_v1 }
   0xa   :  { %1302 = vmatmul.mubr.msk.bf16.vlgmr.msra.gmra.mrb[0].mxu0 %vm92_vm0, %v1327_v4  ;;  %1310 = vmatmul.mubr.msk.bf16.vlgmr.msra.gmra.mrb[0].mxu1 %vm92_vm0, %v1329_v5 }
   0xb   :  { %12 = vsyncpa [#allocation5], 0  ;;  %1305 = vmatprep.mubr.msk.bf16.mxu0 %vm92_vm0, %v1330_v6  ;;  %1313 = vmatprep.mubr.msk.bf16.mxu1 %vm92_vm0, %v1332_v7  ;;  %v1331_v8 = vld [vmem:[%s2595_s0 + $0x18] sm:$0xff]   ;;  %vm214_vm1 = vcmask 130048   ;;  %v411_v10 = vld [vmem:[%s2597_s2 + $0x10] sm:$0xff] }
   0xc   :  { %v1333_v9 = vld [vmem:[%s2595_s0 + $0x38] sm:$0xff]   ;;  %v419_v11 = vld [vmem:[%s2597_s2 + $0x50] sm:$0xff]  ;;  %v409_v26 = vld [vmem:[%s2597_s2] sm:$0xff] }
   0xd   :  { %v417_v27 = vld [vmem:[%s2597_s2 + $0x40] sm:$0xff]  ;;  %v412_v34 = vld [vmem:[%s2597_s2 + $0x18] sm:$0xff]  ;;  %v410_v45 = vld [vmem:[%s2597_s2 + $0x8] sm:$0xff] }
   0xe   :  { %v420_v43 = vld [vmem:[%s2597_s2 + $0x58] sm:$0xff]  ;;  %v418_v48 = vld [vmem:[%s2597_s2 + $0x48] sm:$0xff]  ;;  %v415_v49 = vld [vmem:[%s2597_s2 + $0x30] sm:$0xff] }
   0xf   :  { %v423_v55 = vld [vmem:[%s2597_s2 + $0x70] sm:$0xff]  ;;  %v413_v62 = vld [vmem:[%s2597_s2 + $0x20] sm:$0xff]  ;;  %v416_v5 = vld [vmem:[%s2597_s2 + $0x38] sm:$0xff] }
  0x12   :  { %1306 = vmatmul.mubr.msk.bf16.gmra.mrb[4].mxu0 %vm92_vm0, %v1331_v8  ;;  %1314 = vmatmul.mubr.msk.bf16.gmra.mrb[4].mxu1 %vm92_vm0, %v1333_v9  ;;  %v424_v9 = vld [vmem:[%s2597_s2 + $0x78] sm:$0xff] }
  0xdd   :  { %v1545_v12 = vpop.f32.mrb[0].mxu0  ;;  %v1547_v13 = vpop.f32.mrb[0].mxu1 }
  0xde   :  { %2647 = vst [vmem:[#allocation9_spill] sm:$0xff] %v1545_v12  ;;  %2648 = vst [vmem:[#allocation10_spill] sm:$0xff] %v1547_v13  ;;  %v1549_v14 = vpop.f32.mrb[1].mxu0  ;;  %v1551_v15 = vpop.f32.mrb[1].mxu1  ;;  %v221_v16 = vsel %vm214_vm1, %v1545_v12, -inf  ;;  %v1556_v17 = vadd.f32 %v1545_v12, %v411_v10  ;;  %v1559_v18 = vadd.f32 %v1547_v13, %v419_v11  ;;  %v245_v2 = vsel %vm214_vm1, %v1547_v13, -inf }
  0xdf   :  { %2649 = vst [vmem:[#allocation11_spill] sm:$0xff] %v1549_v14  ;;  %2650 = vst [vmem:[#allocation12_spill] sm:$0xff] %v1551_v15  ;;  %222 = vmax.xlane.f32.xlu0 %v221_v16  ;;  %v1561_v19 = vpop.f32.mrb[2].mxu0  ;;  %v1563_v20 = vpop.f32.mrb[2].mxu1  ;;  %v215_v24 = vsel %vm214_vm1, %v1549_v14, -inf  ;;  %v239_v30 = vsel %vm214_vm1, %v1551_v15, -inf  ;;  %v1588_v31 = vadd.f32 %v409_v26, %v1549_v14  ;;  %v1604_v38 = vadd.f32 %v417_v27, %v1551_v15 }
  0xe0   :  { %2651 = vst [vmem:[#allocation13_spill] sm:$0xff] %v1561_v19  ;;  %2652 = vst [vmem:[#allocation14_spill] sm:$0xff] %v1563_v20  ;;  %v1565_v21 = vpop.f32.mrb[3].mxu0  ;;  %v1567_v22 = vpop.f32.mrb[3].mxu1  ;;  %v447_v23 = vsel %vm214_vm1, %v1556_v17, -inf  ;;  %v471_v25 = vsel %vm214_vm1, %v1559_v18, -inf  ;;  %v1613_v42 = vadd.f32 %v1561_v19, %v412_v34  ;;  %v1626_v47 = vadd.f32 %v1563_v20, %v420_v43 }
  0xe1   :  { %2653 = vst [vmem:[#allocation15_spill] sm:$0xff] %v1565_v21  ;;  %2654 = vst [vmem:[#allocation16_spill] sm:$0xff] %v1567_v22  ;;  %448 = vmax.xlane.f32.xlu1 %v447_v23  ;;  %v224_v37 = vsel %vm214_vm1, %v1561_v19, -inf  ;;  %v441_v41 = vsel %vm214_vm1, %v1588_v31, -inf  ;;  %v465_v44 = vsel %vm214_vm1, %v1604_v38, -inf  ;;  %v218_v50 = vsel %vm214_vm1, %v1565_v21, -inf }
  0xe2   :  { %v450_v46 = vsel %vm214_vm1, %v1613_v42, -inf  ;;  %v1637_v51 = vadd.f32 %v410_v45, %v1565_v21  ;;  %v474_v52 = vsel %vm214_vm1, %v1626_v47, -inf  ;;  %v1642_v53 = vadd.f32 %v418_v48, %v1567_v22  ;;  %v421_v11 = vld [vmem:[%s2597_s2 + $0x60] sm:$0xff]  ;;  %v422_v34 = vld [vmem:[%s2597_s2 + $0x68] sm:$0xff] }
  0xe3   :  { %216 = vmax.xlane.f32.xlu0 %v215_v24  ;;  %v242_v6 = vsel %vm214_vm1, %v1567_v22, -inf  ;;  %v248_v10 = vsel %vm214_vm1, %v1563_v20, -inf  ;;  %v414_v24 = vld [vmem:[%s2597_s2 + $0x28] sm:$0xff]  ;;  %v407_v48 = vlaneseq  ;;  %s1468_s2 = smov [#allocation2]  }
  0xe4   :  { %v444_v56 = vsel %vm214_vm1, %v1637_v51, -inf  ;;  %v468_v57 = vsel %vm214_vm1, %v1642_v53, -inf  ;;  %s1234_s16 = sshll.u32 %s1468_s2, 4  ;;  %s1235_s16 = int_to_ptr.vmem [resolvable:$true] %s1234_s16 }
  0xe5   :  { %472 = vmax.xlane.f32.xlu1 %v471_v25  ;;  %v1581_v28 = vpop.f32.mrb[4].mxu0  ;;  %v1583_v29 = vpop.f32.mrb[4].mxu1  ;;  %s1398_s17 = scalar_lea.vmem %s1235_s16, 16  ;;  %s1402_s18 = scalar_lea.vmem %s1235_s16, 32 }
  0xe6   :  { %2655 = vst [vmem:[#allocation17_spill] sm:$0xff] %v1581_v28  ;;  %2656 = vst [vmem:[#allocation18_spill] sm:$0xff] %v1583_v29  ;;  %v1590_v32 = vpop.f32.mrb[5].mxu0  ;;  %v1592_v33 = vpop.f32.mrb[5].mxu1  ;;  %v1645_v54 = vadd.f32 %v1581_v28, %v415_v49  ;;  %v1657_v59 = vadd.f32 %v1583_v29, %v423_v55  ;;  %v233_v60 = vsel %vm214_vm1, %v1581_v28, -inf  ;;  %v257_v7 = vsel %vm214_vm1, %v1583_v29, -inf  ;;  %p1399_p0 = scmp.ne.s32.totalorder %s1235_s16, %s1398_s17  ;;  %p1403_p1 = scmp.lt.s32.totalorder %s1235_s16, %s1235_s16 }
  0xe7   :  { %2657 = vst [vmem:[#allocation19_spill] sm:$0xff] %v1590_v32  ;;  %2658 = vst [vmem:[#allocation20_spill] sm:$0xff] %v1592_v33  ;;  %240 = vmax.xlane.f32.xlu0 %v239_v30  ;;  %v1597_v35 = vpop.f32.mrb[6].mxu0  ;;  %v1599_v36 = vpop.f32.mrb[6].mxu1  ;;  %v227_v63 = vsel %vm214_vm1, %v1590_v32, -inf  ;;  %v1671_v1 = vadd.f32 %v413_v62, %v1590_v32  ;;  %v251_v4 = vsel %vm214_vm1, %v1592_v33, -inf  ;;  %v1708_v26 = vadd.f32 %v421_v11, %v1592_v33  ;;  %p1404_p2 = scmp.lt.s32.totalorder %s1402_s18, %s1398_s17 }
  0xe8   :  { %2659 = vst [vmem:[#allocation21_spill] sm:$0xff] %v1597_v35  ;;  %v1606_v39 = vpop.f32.mrb[7].mxu0  ;;  %v1608_v40 = vpop.f32.mrb[7].mxu1  ;;  %v459_v58 = vsel %vm214_vm1, %v1645_v54, -inf  ;;  %v483_v61 = vsel %vm214_vm1, %v1657_v59, -inf  ;;  %v236_v0 = vsel %vm214_vm1, %v1597_v35, -inf  ;;  %v1687_v8 = vadd.f32 %v1597_v35, %v416_v5 }
  0xe9   :  { %2660 = vst [vmem:[#allocation22_spill] sm:$0xff] %v1606_v39  ;;  %2661 = vst [vmem:[#allocation23_spill] sm:$0xff] %v1608_v40  ;;  %225 = vmax.xlane.f32.xlu1 %v224_v37  ;;  %v453_v3 = vsel %vm214_vm1, %v1671_v1, -inf  ;;  %v1700_v23 = vadd.f32 %v1599_v36, %v424_v9  ;;  %v260_v25 = vsel %vm214_vm1, %v1599_v36, -inf  ;;  %v1713_v30 = vadd.f32 %v414_v24, %v1606_v39  ;;  %p1405_p3 = por %p1404_p2, %p1403_p1 }
  0xea   :  { %v462_v16 = vsel %vm214_vm1, %v1687_v8, -inf  ;;  %v477_v37 = vsel %vm214_vm1, %v1708_v26, -inf  ;;  %v1723_v43 = vadd.f32 %v422_v34, %v1608_v40  ;;  %v1731_v49 = vand.u32 127, %v407_v48 }
  0xeb   :  { %442 = vmax.xlane.f32.xlu0 %v441_v41  ;;  %v486_v27 = vsel %vm214_vm1, %v1700_v23, -inf  ;;  %v456_v41 = vsel %vm214_vm1, %v1713_v30, -inf  ;;  %p1406_p4 = pnand %p1405_p3, %p1399_p0 }
  0xec   :  { %v480_v45 = vsel %vm214_vm1, %v1723_v43, -inf }
  0xed   :  { %466 = vmax.xlane.f32.xlu1 %v465_v44  ;;  %v230_v44 = vsel %vm214_vm1, %v1606_v39, -inf }
  0xef   :  { %451 = vmax.xlane.f32.xlu0 %v450_v46  ;;  %v254_v46 = vsel %vm214_vm1, %v1608_v40, -inf }
  0xf1   :  { %219 = vmax.xlane.f32.xlu1 %v218_v50 }
  0xf3   :  { %475 = vmax.xlane.f32.xlu0 %v474_v52 }
  0xf5   :  { %445 = vmax.xlane.f32.xlu1 %v444_v56 }
  0xf7   :  { %469 = vmax.xlane.f32.xlu0 %v468_v57 }
  0xf9   :  { %460 = vmax.xlane.f32.xlu1 %v459_v58 }
  0xfb   :  { %234 = vmax.xlane.f32.xlu0 %v233_v60 }
  0xfd   :  { %484 = vmax.xlane.f32.xlu1 %v483_v61 }
  0xff   :  { %228 = vmax.xlane.f32.xlu0 %v227_v63 }
 0x101   :  { %237 = vmax.xlane.f32.xlu1 %v236_v0 }
 0x103   :  { %246 = vmax.xlane.f32.xlu0 %v245_v2 }
 0x105   :  { %454 = vmax.xlane.f32.xlu1 %v453_v3 }
 0x107   :  { %252 = vmax.xlane.f32.xlu0 %v251_v4 }
 0x109   :  { %243 = vmax.xlane.f32.xlu1 %v242_v6 }
 0x10b   :  { %258 = vmax.xlane.f32.xlu0 %v257_v7 }
 0x10d   :  { %249 = vmax.xlane.f32.xlu1 %v248_v10 }
 0x10f   :  { %463 = vmax.xlane.f32.xlu0 %v462_v16 }
 0x111   :  { %261 = vmax.xlane.f32.xlu1 %v260_v25 }
 0x113   :  { %487 = vmax.xlane.f32.xlu0 %v486_v27 }
 0x115   :  { %478 = vmax.xlane.f32.xlu1 %v477_v37 }
 0x117   :  { %457 = vmax.xlane.f32.xlu0 %v456_v41 }
 0x119   :  { %231 = vmax.xlane.f32.xlu1 %v230_v44 }
 0x11b   :  { %481 = vmax.xlane.f32.xlu0 %v480_v45 }
 0x11d   :  { %255 = vmax.xlane.f32.xlu1 %v254_v46 }
 0x16c   :  { %v1733_v50 = vpop.xlane.xlu0 %222 }
 0x16d   :  { %2662 = vst [vmem:[#allocation24_spill] sm:$0xff] %v1733_v50  ;;  %vm763_vm2 = vcmp.ge.f32.partialorder %v1545_v12, %v1733_v50  ;;  %v265_v45 = vsub.f32 %v1545_v12, %v1733_v50 }
 0x16e   :  { %v449_v52 = vpop.xlane.xlu1 %448  ;;  %v779_v55 = vsel %vm763_vm2, %v1731_v49, 16 }
 0x16f   :  { %vm491_vm3 = vcmp.ge.f32.partialorder %v1556_v17, %v449_v52  ;;  %v1740_v56 = vsel %vm214_vm1, %v779_v55, 2147483647 }
 0x170   :  { %v507_v57 = vsel %vm491_vm3, %v1731_v49, 16  ;;  %v1743_v58 = vpop.xlane.xlu0 %216  ;;  %v825_v60 = vshra.s32 %v1740_v56, 16 }
 0x171   :  { %2663 = vst [vmem:[#allocation25_spill] sm:$0xff] %v1743_v58  ;;  %vm761_vm4 = vcmp.ge.f32.partialorder %v1549_v14, %v1743_v58  ;;  %v1756_v0 = vsel %vm214_vm1, %v507_v57, 2147483647 }
 0x172   :  { %v473_v61 = vpop.xlane.xlu1 %472  ;;  %v1748_v62 = vcvt.s32.f32 %v825_v60  ;;  %v777_v63 = vsel %vm761_vm4, %v1731_v49, 16  ;;  %v283_v60 = vmul.f32 1.442695, %v265_v45 }
 0x173   :  { %vm499_vm5 = vcmp.ge.f32.partialorder %v1559_v18, %v473_v61  ;;  %v1753_v17 = vsel %vm214_vm1, %v777_v63, 2147483647  ;;  %v553_v18 = vshra.s32 %v1756_v0, 16 }
 0x174   :  { %v515_v2 = vsel %vm499_vm5, %v1731_v49, 16  ;;  %v1759_v3 = vpop.xlane.xlu0 %240  ;;  %828 = vmin.xlane.f32.xlu0 %v1748_v62  ;;  %v795_v4 = vshra.s32 %v1753_v17, 16  ;;  %1334 = vpow2.f32 %v283_v60 }
 0x175   :  { %2664 = vst [vmem:[#allocation26_spill] sm:$0xff] %v1759_v3  ;;  %v1771_v7 = vsel %vm214_vm1, %v515_v2, 2147483647  ;;  %v1780_v25 = vcvt.s32.f32 %v553_v18 }
 0x176   :  { %v1763_v5 = vpop.xlane.xlu1 %225  ;;  %v1765_v6 = vcvt.s32.f32 %v795_v4  ;;  %v673_v34 = vshra.s32 %v1771_v7, 16 }
 0x177   :  { %2665 = vst [vmem:[#allocation27_spill] sm:$0xff] %v1763_v5  ;;  %vm764_vm6 = vcmp.ge.f32.partialorder %v1561_v19, %v1763_v5 }
 0x178   :  { %v443_v9 = vpop.xlane.xlu0 %442  ;;  %798 = vmin.xlane.f32.xlu0 %v1765_v6  ;;  %v780_v10 = vsel %vm764_vm6, %v1731_v49, 16 }
 0x179   :  { %vm489_vm7 = vcmp.ge.f32.partialorder %v1588_v31, %v443_v9  ;;  %v1777_v11 = vsel %vm214_vm1, %v780_v10, 2147483647 }
 0x17a   :  { %v505_v16 = vsel %vm489_vm7, %v1731_v49, 16  ;;  %v467_v24 = vpop.xlane.xlu1 %466  ;;  %v840_v27 = vshra.s32 %v1777_v11, 16 }
 0x17b   :  { %vm497_vm8 = vcmp.ge.f32.partialorder %v1604_v38, %v467_v24  ;;  %v1786_v37 = vsel %vm214_vm1, %v505_v16, 2147483647  ;;  %v1799_v38 = vcvt.s32.f32 %v673_v34 }
 0x17c   :  { %v513_v41 = vsel %vm497_vm8, %v1731_v49, 16  ;;  %v452_v31 = vpop.xlane.xlu0 %451  ;;  %556 = vmin.xlane.f32.xlu0 %v1780_v25  ;;  %v1790_v44 = vcvt.s32.f32 %v840_v27  ;;  %v523_v52 = vshra.s32 %v1786_v37, 16  ;;  %vm769_vm8 = vcmp.ge.f32.partialorder %v1551_v15, %v1759_v3 }
 0x17d   :  { %vm492_vm9 = vcmp.ge.f32.partialorder %v1613_v42, %v452_v31  ;;  %v1805_v55 = vsel %vm214_vm1, %v513_v41, 2147483647 }
 0x17e   :  { %v508_v46 = vsel %vm492_vm9, %v1731_v49, 16  ;;  %v1796_v48 = vpop.xlane.xlu1 %219  ;;  %843 = vmin.xlane.f32.xlu1 %v1790_v44  ;;  %v1817_v18 = vcvt.s32.f32 %v523_v52  ;;  %v643_v10 = vshra.s32 %v1805_v55, 16 }
 0x17f   :  { %2666 = vst [vmem:[#allocation28_spill] sm:$0xff] %v1796_v48  ;;  %vm762_vm10 = vcmp.ge.f32.partialorder %v1565_v21, %v1796_v48  ;;  %v1814_v63 = vsel %vm214_vm1, %v508_v46, 2147483647 }
 0x180   :  { %v476_v57 = vpop.xlane.xlu0 %475  ;;  %676 = vmin.xlane.f32.xlu0 %v1799_v38  ;;  %v778_v42 = vsel %vm762_vm10, %v1731_v49, 16  ;;  %v568_v27 = vshra.s32 %v1814_v63, 16 }
 0x181   :  { %vm500_vm11 = vcmp.ge.f32.partialorder %v1626_v47, %v476_v57  ;;  %v1811_v61 = vsel %vm214_vm1, %v778_v42, 2147483647  ;;  %v266_v47 = vsub.f32 %v1561_v19, %v1763_v5 }
 0x182   :  { %v516_v2 = vsel %vm500_vm11, %v1731_v49, 16  ;;  %v446_v4 = vpop.xlane.xlu1 %445  ;;  %v810_v9 = vshra.s32 %v1811_v61, 16  ;;  %v1841_v52 = vcvt.s32.f32 %v568_v27 }
 0x183   :  { %vm490_vm12 = vcmp.ge.f32.partialorder %v1637_v51, %v446_v4  ;;  %v1829_v34 = vsel %vm214_vm1, %v516_v2, 2147483647  ;;  %v1835_v51 = vcvt.s32.f32 %v643_v10  ;;  %v285_v45 = vmul.f32 1.442695, %v266_v47 }
 0x184   :  { %v470_v16 = vpop.xlane.xlu0 %469  ;;  %526 = vmin.xlane.f32.xlu0 %v1817_v18  ;;  %v1825_v24 = vcvt.s32.f32 %v810_v9  ;;  %2667 = vst [vmem:[#allocation29_spill] sm:$0xff] %v1829_v34  ;;  %v506_v41 = vsel %vm490_vm12, %v1731_v49, 16  ;;  %2669 = vst [vmem:[#allocation31_spill] sm:$0xff] %v1841_v52  ;;  %v688_v57 = vshra.s32 %v1829_v34, 16 }
 0x185   :  { %vm498_vm13 = vcmp.ge.f32.partialorder %v1642_v53, %v470_v16  ;;  %v1847_v42 = vsel %vm214_vm1, %v506_v41, 2147483647  ;;  %1336 = vpow2.f32 %v285_v45 }
 0x186   :  { %v1832_v31 = vpop.xlane.xlu1 %460  ;;  %813 = vmin.xlane.f32.xlu1 %v1825_v24  ;;  %2670 = vst [vmem:[#allocation32_spill] sm:$0xff] %v1847_v42  ;;  %v514_v60 = vsel %vm498_vm13, %v1731_v49, 16  ;;  %v1857_v10 = vcvt.s32.f32 %v688_v57  ;;  %v538_v16 = vshra.s32 %v1847_v42, 16 }
 0x187   :  { %v1862_v27 = vsel %vm214_vm1, %v514_v60, 2147483647  ;;  %vm495_vm0 = vcmp.ge.f32.partialorder %v1645_v54, %v1832_v31 }
 0x188   :  { %v1838_v46 = vpop.xlane.xlu0 %234  ;;  %646 = vmin.xlane.f32.xlu0 %v1835_v51  ;;  %2673 = vst [vmem:[#allocation35_spill] sm:$0xff] %v1857_v10  ;;  %2674 = vst [vmem:[#allocation36_spill] sm:$0xff] %v1862_v27  ;;  %v1872_v45 = vcvt.s32.f32 %v538_v16  ;;  %v658_v57 = vshra.s32 %v1862_v27, 16 }
 0x189   :  { %2668 = vst [vmem:[#allocation30_spill] sm:$0xff] %v1838_v46  ;;  %vm767_vm14 = vcmp.ge.f32.partialorder %v1581_v28, %v1838_v46 }
 0x18a   :  { %v485_v2 = vpop.xlane.xlu1 %484  ;;  %571 = vmin.xlane.f32.xlu1 %v1841_v52  ;;  %v783_v53 = vsel %vm767_vm14, %v1731_v49, 16  ;;  %2678 = vst [vmem:[#allocation40_spill] sm:$0xff] %v1872_v45 }
 0x18b   :  { %v1853_v4 = vsel %vm214_vm1, %v783_v53, 2147483647  ;;  %v1335_v53 = vpop.eup %1334  ;;  %vm503_vm2 = vcmp.ge.f32.partialorder %v1657_v59, %v485_v2 }
 0x18c   :  { %2671 = vst [vmem:[#allocation33_spill] sm:$0xff] %v1853_v4  ;;  %v1855_v9 = vpop.xlane.xlu0 %228  ;;  %v885_v47 = vshra.s32 %v1853_v4, 16  ;;  %v317_v4 = vsel %vm214_vm1, %v1335_v53, 0.0 }
 0x18d   :  { %2672 = vst [vmem:[#allocation34_spill] sm:$0xff] %v1855_v9  ;;  %vm765_vm15 = vcmp.ge.f32.partialorder %v1590_v32, %v1855_v9 }
 0x18e   :  { %v1864_v41 = vpop.xlane.xlu1 %237  ;;  %691 = vmin.xlane.f32.xlu1 %v1857_v10  ;;  %v1867_v5 = vcvt.s32.f32 %v885_v47  ;;  %v263_v47 = vsub.f32 %v1549_v14, %v1743_v58  ;;  %v1883_v10 = vcvt.s32.f32 %v658_v57  ;;  %v264_v57 = vsub.f32 %v1565_v21, %v1796_v48 }
 0x18f   :  { %2675 = vst [vmem:[#allocation37_spill] sm:$0xff] %v1864_v41  ;;  %v1337_v16 = vpop.eup %1336  ;;  %v511_v48 = vsel %vm495_vm0, %v1731_v49, 16  ;;  %vm768_vm11 = vcmp.ge.f32.partialorder %v1597_v35, %v1864_v41 }
 0x190   :  { %2676 = vst [vmem:[#allocation38_spill] sm:$0xff] %v1867_v5  ;;  %v1869_v50 = vpop.xlane.xlu0 %246  ;;  %888 = vmin.xlane.f32.xlu0 %v1867_v5  ;;  %2679 = vst [vmem:[#allocation41_spill] sm:$0xff] %v1883_v10  ;;  %v279_v27 = vmul.f32 1.442695, %v263_v47  ;;  %v320_v58 = vsel %vm214_vm1, %v1337_v16, 0.0 }
 0x191   :  { %2677 = vst [vmem:[#allocation39_spill] sm:$0xff] %v1869_v50  ;;  %v273_v19 = vsub.f32 %v1547_v13, %v1869_v50  ;;  %v281_v42 = vmul.f32 1.442695, %v264_v57  ;;  %v1918_v52 = vsel %vm214_vm1, %v511_v48, 2147483647  ;;  %vm771_vm10 = vcmp.ge.f32.partialorder %v1547_v13, %v1869_v50 }
 0x192   :  { %v1877_v60 = vpop.xlane.xlu1 %454  ;;  %541 = vmin.xlane.f32.xlu1 %v1872_v45  ;;  %v613_v57 = vshra.s32 %v1918_v52, 16 }
 0x193   :  { %v299_v12 = vmul.f32 1.442695, %v273_v19  ;;  %v781_v19 = vsel %vm765_vm15, %v1731_v49, 16  ;;  %vm493_vm5 = vcmp.ge.f32.partialorder %v1671_v1, %v1877_v60 }
 0x194   :  { %318 = vadd.xlane.f32.xlu0 %v317_v4  ;;  %v1890_v45 = vpop.xlane.xlu0 %252  ;;  %v1899_v4 = vsel %vm214_vm1, %v781_v19, 2147483647 }
 0x195   :  { %1338 = vpow2.f32 %v299_v12  ;;  %2681 = vst [vmem:[#allocation43_spill] sm:$0xff] %v1890_v45  ;;  %vm773_vm12 = vcmp.ge.f32.partialorder %v1592_v33, %v1890_v45 }
 0x196   :  { %v1885_v5 = vpop.xlane.xlu1 %243  ;;  %661 = vmin.xlane.f32.xlu1 %v1883_v10  ;;  %1340 = vpow2.f32 %v279_v27  ;;  %v855_v27 = vshra.s32 %v1899_v4, 16  ;;  %v789_v13 = vsel %vm773_vm12, %v1731_v49, 16 }
 0x197   :  { %2680 = vst [vmem:[#allocation42_spill] sm:$0xff] %v1885_v5  ;;  %vm770_vm13 = vcmp.ge.f32.partialorder %v1567_v22, %v1885_v5 }
 0x198   :  { %v1903_v47 = vpop.xlane.xlu0 %258  ;;  %v1915_v31 = vcvt.s32.f32 %v855_v27 }
 0x199   :  { %2683 = vst [vmem:[#allocation45_spill] sm:$0xff] %v1903_v47  ;;  %vm775_vm0 = vcmp.ge.f32.partialorder %v1583_v29, %v1903_v47 }
 0x19a   :  { %v1894_v53 = vpop.xlane.xlu1 %249  ;;  %321 = vadd.xlane.f32.xlu1 %v320_v58  ;;  %v271_v58 = vsub.f32 %v1551_v15, %v1759_v3  ;;  %2685 = vst [vmem:[#allocation47_spill] sm:$0xff] %v1915_v31 }
 0x19b   :  { %2682 = vst [vmem:[#allocation44_spill] sm:$0xff] %v1894_v53  ;;  %v274_v12 = vsub.f32 %v1563_v20, %v1894_v53  ;;  %vm772_vm15 = vcmp.ge.f32.partialorder %v1563_v20, %v1894_v53 }
 0x19c   :  { %v295_v21 = vmul.f32 1.442695, %v271_v58  ;;  %v464_v54 = vpop.xlane.xlu0 %463  ;;  %v272_v58 = vsub.f32 %v1567_v22, %v1885_v5  ;;  %v786_v22 = vsel %vm770_vm13, %v1731_v49, 16  ;;  %v788_v20 = vsel %vm772_vm15, %v1731_v49, 16 }
 0x19d   :  { %v301_v14 = vmul.f32 1.442695, %v274_v12  ;;  %vm496_vm4 = vcmp.ge.f32.partialorder %v1687_v8, %v464_v54  ;;  %v1943_v54 = vcvt.s32.f32 %v613_v57 }
 0x19e   :  { %v1907_v16 = vpop.xlane.xlu1 %261 }
 0x19f   :  { %2684 = vst [vmem:[#allocation46_spill] sm:$0xff] %v1907_v16  ;;  %v1339_v10 = vpop.eup %1338  ;;  %1342 = vpow2.f32 %v301_v14  ;;  %v519_v14 = vsel %vm503_vm2, %v1731_v49, 16 }
 0x1a0   :  { %v341_v19 = vsel %vm214_vm1, %v1339_v10, 0.0  ;;  %v1341_v34 = vpop.eup %1340  ;;  %1344 = vpow2.f32 %v281_v42  ;;  %v1931_v42 = vsel %vm214_vm1, %v519_v14, 2147483647  ;;  %v488_v27 = vpop.xlane.xlu0 %487 }
 0x1a1   :  { %342 = vadd.xlane.f32.xlu0 %v341_v19  ;;  %1346 = vpow2.f32 %v295_v21  ;;  %v311_v59 = vsel %vm214_vm1, %v1341_v34, 0.0  ;;  %v512_v19 = vsel %vm496_vm4, %v1731_v49, 16  ;;  %v733_v14 = vshra.s32 %v1931_v42, 16 }
 0x1a2   :  { %v479_v12 = vpop.xlane.xlu1 %478  ;;  %vm504_vm6 = vcmp.ge.f32.partialorder %v1700_v23, %v488_v27  ;;  %v1953_v1 = vsel %vm214_vm1, %v512_v19, 2147483647 }
 0x1a3   :  { %vm501_vm7 = vcmp.ge.f32.partialorder %v1708_v26, %v479_v12  ;;  %v520_v57 = vsel %vm504_vm6, %v1731_v49, 16  ;;  %v628_v26 = vshra.s32 %v1953_v1, 16 }
 0x1a5   :  { %858 = vmin.xlane.f32.xlu0 %v1915_v31  ;;  %v297_v31 = vmul.f32 1.442695, %v272_v58  ;;  %v517_v58 = vsel %vm501_vm7, %v1731_v49, 16 }
 0x1a6   :  { %v1922_v10 = vpop.xlane.xlu1 %231 }
 0x1a7   :  { %2686 = vst [vmem:[#allocation48_spill] sm:$0xff] %v1922_v10  ;;  %vm766_vm3 = vcmp.ge.f32.partialorder %v1606_v39, %v1922_v10  ;;  %1348 = vpow2.f32 %v297_v31 }
 0x1a8   :  { %v782_v48 = vsel %vm766_vm3, %v1731_v49, 16  ;;  %vm776_vm3 = vcmp.ge.f32.partialorder %v1599_v36, %v1907_v16 }
 0x1a9   :  { %v1343_v2 = vpop.eup %1342  ;;  %312 = vadd.xlane.f32.xlu0 %v311_v59  ;;  %v1936_v21 = vsel %vm214_vm1, %v782_v48, 2147483647  ;;  %v509_v48 = vsel %vm493_vm5, %v1731_v49, 16 }
 0x1aa   :  { %2687 = vst [vmem:[#allocation49_spill] sm:$0xff] %v1936_v21  ;;  %v344_v8 = vsel %vm214_vm1, %v1343_v2, 0.0  ;;  %v870_v34 = vshra.s32 %v1936_v21, 16  ;;  %v1345_v60 = vpop.eup %1344  ;;  %v1957_v2 = vcvt.s32.f32 %v733_v14  ;;  %v1960_v23 = vsel %vm214_vm1, %v509_v48, 2147483647  ;;  %v2002_v3 = vpop.xlane.xlu1 %255 }
 0x1ab   :  { %345 = vadd.xlane.f32.xlu1 %v344_v8  ;;  %v1347_v27 = vpop.eup %1346  ;;  %v458_v8 = vpop.xlane.xlu0 %457  ;;  %v314_v12 = vsel %vm214_vm1, %v1345_v60, 0.0  ;;  %v583_v19 = vshra.s32 %v1960_v23, 16  ;;  %v1975_v14 = vsel %vm214_vm1, %v517_v58, 2147483647  ;;  %v1977_v48 = vcvt.s32.f32 %v628_v26  ;;  %2690 = vst [vmem:[#allocation52_spill] sm:$0xff] %v2002_v3 }
 0x1ac   :  { %v1947_v59 = vcvt.s32.f32 %v870_v34  ;;  %v1967_v34 = vsel %vm214_vm1, %v520_v57, 2147483647  ;;  %vm494_vm9 = vcmp.ge.f32.partialorder %v1713_v30, %v458_v8  ;;  %v335_v31 = vsel %vm214_vm1, %v1347_v27, 0.0 }
 0x1ad   :  { %616 = vmin.xlane.f32.xlu0 %v1943_v54  ;;  %v748_v60 = vshra.s32 %v1967_v34, 16  ;;  %v785_v57 = vsel %vm769_vm8, %v1731_v49, 16  ;;  %v1985_v30 = vcvt.s32.f32 %v583_v19  ;;  %v703_v27 = vshra.s32 %v1975_v14, 16 }
 0x1ae   :  { %2688 = vst [vmem:[#allocation50_spill] sm:$0xff] %v1947_v59  ;;  %v1989_v58 = vsel %vm214_vm1, %v785_v57, 2147483647  ;;  %v787_v26 = vsel %vm771_vm10, %v1731_v49, 16  ;;  %vm774_vm14 = vcmp.ge.f32.partialorder %v1608_v40, %v2002_v3 }
 0x1af   :  { %873 = vmin.xlane.f32.xlu1 %v1947_v59  ;;  %2689 = vst [vmem:[#allocation51_spill] sm:$0xff] %v1989_v58  ;;  %v1994_v8 = vcvt.s32.f32 %v748_v60  ;;  %v2005_v57 = vcvt.s32.f32 %v703_v27  ;;  %v915_v50 = vshra.s32 %v1989_v58, 16  ;;  %v784_v60 = vsel %vm768_vm11, %v1731_v49, 16 }
 0x1b0   :  { %v2010_v15 = vsel %vm214_vm1, %v787_v26, 2147483647  ;;  %v269_v27 = vsub.f32 %v1581_v28, %v1838_v46  ;;  %v2021_v21 = vsel %vm214_vm1, %v784_v60, 2147483647  ;;  %v2030_v58 = vsel %vm214_vm1, %v789_v13, 2147483647 }
 0x1b1   :  { %736 = vmin.xlane.f32.xlu0 %v1957_v2  ;;  %v1349_v19 = vpop.eup %1348  ;;  %2691 = vst [vmem:[#allocation53_spill] sm:$0xff] %v2021_v21  ;;  %v2025_v26 = vcvt.s32.f32 %v915_v50  ;;  %v945_v5 = vshra.s32 %v2010_v15, 16  ;;  %v900_v46 = vshra.s32 %v2021_v21, 16  ;;  %v790_v50 = vsel %vm774_vm14, %v1731_v49, 16 }
 0x1b2   :  { %v338_v59 = vsel %vm214_vm1, %v1349_v19, 0.0  ;;  %v482_v19 = vpop.xlane.xlu0 %481  ;;  %v2040_v28 = vsel %vm214_vm1, %v786_v22, 2147483647  ;;  %v277_v13 = vsub.f32 %v1583_v29, %v1903_v47  ;;  %v270_v22 = vsub.f32 %v1597_v35, %v1864_v41 }
 0x1b3   :  { %315 = vadd.xlane.f32.xlu1 %v314_v12  ;;  %v510_v12 = vsel %vm494_vm9, %v1731_v49, 16  ;;  %v2047_v53 = vcvt.s32.f32 %v945_v5  ;;  %vm502_vm2 = vcmp.ge.f32.partialorder %v1723_v43, %v482_v19  ;;  %v2058_v21 = vcvt.s32.f32 %v900_v46 }
 0x1b4   :  { %v930_v47 = vshra.s32 %v2040_v28, 16  ;;  %v791_v5 = vsel %vm775_vm0, %v1731_v49, 16  ;;  %v267_v29 = vsub.f32 %v1590_v32, %v1855_v9  ;;  %v2065_v43 = vsel %vm214_vm1, %v788_v20, 2147483647 }
 0x1b5   :  { %336 = vadd.xlane.f32.xlu0 %v335_v31  ;;  %v1998_v31 = vsel %vm214_vm1, %v510_v12, 2147483647  ;;  %v307_v19 = vmul.f32 1.442695, %v277_v13  ;;  %v278_v35 = vsub.f32 %v1599_v36, %v1907_v16  ;;  %v293_v20 = vmul.f32 1.442695, %v270_v22 }
 0x1b6   :  { %v598_v12 = vshra.s32 %v1998_v31, 16  ;;  %v2080_v13 = vcvt.s32.f32 %v930_v47  ;;  %v960_v9 = vshra.s32 %v2065_v43, 16  ;;  %v275_v32 = vsub.f32 %v1592_v33, %v1890_v45 }
 0x1b7   :  { %631 = vmin.xlane.f32.xlu1 %v1977_v48  ;;  %v792_v16 = vsel %vm776_vm3, %v1731_v49, 16  ;;  %v309_v47 = vmul.f32 1.442695, %v278_v35 }
 0x1b8   :  { %v2035_v60 = vcvt.s32.f32 %v598_v12  ;;  %v975_v12 = vshra.s32 %v2030_v58, 16  ;;  %v2096_v45 = vcvt.s32.f32 %v960_v9 }
 0x1b9   :  { %586 = vmin.xlane.f32.xlu0 %v1985_v30 }
 0x1ba   :  { %v2069_v41 = vcvt.s32.f32 %v975_v12  ;;  %v287_v12 = vmul.f32 1.442695, %v267_v29  ;;  %v268_v29 = vsub.f32 %v1606_v39, %v1922_v10  ;;  %v276_v10 = vsub.f32 %v1608_v40, %v2002_v3 }
 0x1bb   :  { %751 = vmin.xlane.f32.xlu1 %v1994_v8 }
 0x1bd   :  { %706 = vmin.xlane.f32.xlu0 %v2005_v57 }
 0x1bf   :  { %339 = vadd.xlane.f32.xlu1 %v338_v59  ;;  %v291_v59 = vmul.f32 1.442695, %v269_v27  ;;  %v2053_v27 = vsel %vm214_vm1, %v790_v50, 2147483647  ;;  %v518_v50 = vsel %vm502_vm2, %v1731_v49, 16 }
 0x1c0   :  { %2692 = vst [vmem:[#allocation54_spill] sm:$0xff] %v2053_v27  ;;  %v990_v46 = vshra.s32 %v2053_v27, 16  ;;  %v2086_v27 = vsel %vm214_vm1, %v518_v50, 2147483647 }
 0x1c1   :  { %918 = vmin.xlane.f32.xlu0 %v2025_v26  ;;  %1350 = vpow2.f32 %v291_v59  ;;  %v2075_v59 = vsel %vm214_vm1, %v791_v5, 2147483647  ;;  %v718_v50 = vshra.s32 %v2086_v27, 16 }
 0x1c2   :  { %1352 = vpow2.f32 %v307_v19  ;;  %v2089_v5 = vcvt.s32.f32 %v990_v46  ;;  %v1005_v22 = vshra.s32 %v2075_v59, 16  ;;  %v2100_v19 = vsel %vm214_vm1, %v792_v16, 2147483647 }
 0x1c3   :  { %601 = vmin.xlane.f32.xlu1 %v2035_v60  ;;  %1354 = vpow2.f32 %v293_v20  ;;  %v303_v46 = vmul.f32 1.442695, %v275_v32  ;;  %v289_v20 = vmul.f32 1.442695, %v268_v29  ;;  %v2108_v9 = vcvt.s32.f32 %v718_v50 }
 0x1c4   :  { %1356 = vpow2.f32 %v287_v12  ;;  %v2103_v33 = vcvt.s32.f32 %v1005_v22  ;;  %v1020_v39 = vshra.s32 %v2100_v19, 16  ;;  %v305_v12 = vmul.f32 1.442695, %v276_v10 }
 0x1c5   :  { %948 = vmin.xlane.f32.xlu0 %v2047_v53  ;;  %1358 = vpow2.f32 %v309_v47 }
 0x1c6   :  { %1360 = vpow2.f32 %v303_v46  ;;  %v2113_v22 = vcvt.s32.f32 %v1020_v39 }
 0x1c7   :  { %903 = vmin.xlane.f32.xlu1 %v2058_v21  ;;  %1362 = vpow2.f32 %v289_v20 }
 0x1c8   :  { %1364 = vpow2.f32 %v305_v12 }
 0x1c9   :  { %978 = vmin.xlane.f32.xlu0 %v2069_v41 }
 0x1cb   :  { %933 = vmin.xlane.f32.xlu1 %v2080_v13  ;;  %v1351_v35 = vpop.eup %1350 }
 0x1cc   :  { %v329_v32 = vsel %vm214_vm1, %v1351_v35, 0.0  ;;  %v1353_v16 = vpop.eup %1352 }
 0x1cd   :  { %993 = vmin.xlane.f32.xlu0 %v2089_v5  ;;  %v1355_v47 = vpop.eup %1354  ;;  %v353_v29 = vsel %vm214_vm1, %v1353_v16, 0.0 }
 0x1ce   :  { %v1357_v50 = vpop.eup %1356  ;;  %v332_v46 = vsel %vm214_vm1, %v1355_v47, 0.0  ;;  %v824_v47 = vand.u32 65535, %v1740_v56  ;;  %v839_v56 = vand.u32 65535, %v1777_v11  ;;  %v522_v11 = vand.u32 65535, %v1786_v37 }
 0x1cf   :  { %963 = vmin.xlane.f32.xlu1 %v2096_v45  ;;  %v1359_v3 = vpop.eup %1358  ;;  %v323_v35 = vsel %vm214_vm1, %v1357_v50, 0.0 }
 0x1d0   :  { %v1361_v40 = vpop.eup %1360  ;;  %v356_v10 = vsel %vm214_vm1, %v1359_v3, 0.0  ;;  %v826_v50 = vcvt.s32.f32 %v824_v47 }
 0x1d1   :  { %1008 = vmin.xlane.f32.xlu0 %v2103_v33  ;;  %v1363_v39 = vpop.eup %1362  ;;  %v347_v20 = vsel %vm214_vm1, %v1361_v40, 0.0 }
 0x1d2   :  { %v1365_v16 = vpop.eup %1364 }
 0x1d3   :  { %721 = vmin.xlane.f32.xlu1 %v2108_v9  ;;  %v350_v12 = vsel %vm214_vm1, %v1365_v16, 0.0 }
 0x1d5   :  { %330 = vadd.xlane.f32.xlu0 %v329_v32  ;;  %v326_v32 = vsel %vm214_vm1, %v1363_v39, 0.0 }
 0x1d7   :  { %1023 = vmin.xlane.f32.xlu1 %v2113_v22 }
 0x1d9   :  { %354 = vadd.xlane.f32.xlu0 %v353_v29 }
 0x1db   :  { %333 = vadd.xlane.f32.xlu1 %v332_v46  ;;  %v794_v46 = vand.u32 65535, %v1753_v17 }
 0x1dd   :  { %324 = vadd.xlane.f32.xlu0 %v323_v35  ;;  %v796_v35 = vcvt.s32.f32 %v794_v46  ;;  %v524_v46 = vcvt.s32.f32 %v522_v11 }
 0x1df   :  { %357 = vadd.xlane.f32.xlu1 %v356_v10  ;;  %v552_v10 = vand.u32 65535, %v1756_v0 }
 0x1e1   :  { %348 = vadd.xlane.f32.xlu0 %v347_v20  ;;  %v554_v17 = vcvt.s32.f32 %v552_v10  ;;  %v567_v10 = vand.u32 65535, %v1814_v63  ;;  %v2694_v63 = vld [vmem:[#allocation31_spill] sm:$0xff] }
 0x1e3   :  { %327 = vadd.xlane.f32.xlu1 %v326_v32  ;;  %v672_v32 = vand.u32 65535, %v1771_v7 }
 0x1e7   :  { %351 = vadd.xlane.f32.xlu1 %v350_v12  ;;  %v841_v12 = vcvt.s32.f32 %v839_v56  ;;  %v569_v56 = vcvt.s32.f32 %v567_v10 }
 0x201   :  { %v2124_v29 = vpop.xlane.xlu0 %828 }
 0x202   :  { %vm830_vm4 = vcmp.eq.f32.partialorder %v1748_v62, %v2124_v29 }
 0x203   :  { %v831_v3 = vsel %vm830_vm4, %v826_v50, inf }
 0x204   :  { %832 = vmin.xlane.f32.xlu0 %v831_v3  ;;  %v642_v3 = vand.u32 65535, %v1805_v55 }
 0x205   :  { %v2129_v40 = vpop.xlane.xlu0 %798 }
 0x206   :  { %vm800_vm5 = vcmp.eq.f32.partialorder %v1765_v6, %v2129_v40  ;;  %v674_v6 = vcvt.s32.f32 %v672_v32 }
 0x207   :  { %v801_v39 = vsel %vm800_vm5, %v796_v35, inf }
 0x208   :  { %802 = vmin.xlane.f32.xlu0 %v801_v39  ;;  %v644_v39 = vcvt.s32.f32 %v642_v3  ;;  %v2697_v3 = vld [vmem:[#allocation36_spill] sm:$0xff] }
 0x209   :  { %v2135_v20 = vpop.xlane.xlu0 %556 }
 0x20a   :  { %vm558_vm6 = vcmp.eq.f32.partialorder %v1780_v25, %v2135_v20  ;;  %v809_v25 = vand.u32 65535, %v1811_v61 }
 0x20b   :  { %v2140_v62 = vpop.xlane.xlu1 %843  ;;  %v559_v16 = vsel %vm558_vm6, %v554_v17, inf  ;;  %v2693_v17 = vld [vmem:[#allocation29_spill] sm:$0xff] }
 0x20c   :  { %560 = vmin.xlane.f32.xlu0 %v559_v16  ;;  %vm845_vm7 = vcmp.eq.f32.partialorder %v1790_v44, %v2140_v62  ;;  %v811_v35 = vcvt.s32.f32 %v809_v25  ;;  %v687_v32 = vand.u32 65535, %v2693_v17 }
 0x20d   :  { %v2144_v0 = vpop.xlane.xlu0 %676  ;;  %v2147_v47 = vsel %vm845_vm7, %v841_v12, inf }
 0x20e   :  { %vm678_vm8 = vcmp.eq.f32.partialorder %v1799_v38, %v2144_v0  ;;  %v689_v12 = vcvt.s32.f32 %v687_v32 }
 0x20f   :  { %v679_v7 = vsel %vm678_vm8, %v674_v6, inf  ;;  %v2695_v6 = vld [vmem:[#allocation32_spill] sm:$0xff] }
 0x210   :  { %680 = vmin.xlane.f32.xlu0 %v679_v7  ;;  %v537_v11 = vand.u32 65535, %v2695_v6  ;;  %v2696_v7 = vld [vmem:[#allocation35_spill] sm:$0xff] }
 0x211   :  { %v2152_v50 = vpop.xlane.xlu0 %526 }
 0x212   :  { %vm528_vm9 = vcmp.eq.f32.partialorder %v1817_v18, %v2152_v50 }
 0x213   :  { %v2157_v44 = vpop.xlane.xlu1 %813  ;;  %v529_v37 = vsel %vm528_vm9, %v524_v46, inf  ;;  %v539_v46 = vcvt.s32.f32 %v537_v11  ;;  %v612_v11 = vand.u32 65535, %v1918_v52 }
 0x214   :  { %530 = vmin.xlane.f32.xlu0 %v529_v37  ;;  %vm815_vm10 = vcmp.eq.f32.partialorder %v1825_v24, %v2157_v44  ;;  %v657_v37 = vand.u32 65535, %v2697_v3  ;;  %v732_v3 = vand.u32 65535, %v1931_v42 }
 0x215   :  { %v2162_v38 = vpop.xlane.xlu0 %646  ;;  %v816_v61 = vsel %vm815_vm10, %v811_v35, inf  ;;  %v2698_v35 = vld [vmem:[#allocation40_spill] sm:$0xff] }
 0x216   :  { %817 = vmin.xlane.f32.xlu1 %v816_v61  ;;  %vm648_vm11 = vcmp.eq.f32.partialorder %v1835_v51, %v2162_v38 }
 0x217   :  { %v2166_v55 = vpop.xlane.xlu1 %571  ;;  %v649_v18 = vsel %vm648_vm11, %v644_v39, inf  ;;  %v659_v39 = vcvt.s32.f32 %v657_v37 }
 0x218   :  { %650 = vmin.xlane.f32.xlu0 %v649_v18  ;;  %vm573_vm12 = vcmp.eq.f32.partialorder %v2694_v63, %v2166_v55 }
 0x219   :  { %v574_v16 = vsel %vm573_vm12, %v569_v56, inf  ;;  %v2699_v56 = vld [vmem:[#allocation41_spill] sm:$0xff] }
 0x21a   :  { %575 = vmin.xlane.f32.xlu1 %v574_v16 }
 0x21b   :  { %v2171_v24 = vpop.xlane.xlu1 %691 }
 0x21c   :  { %vm693_vm13 = vcmp.eq.f32.partialorder %v2696_v7, %v2171_v24 }
 0x21d   :  { %v694_v51 = vsel %vm693_vm13, %v689_v12, inf  ;;  %v2183_v18 = vpop.xlane.xlu0 %888 }
 0x21e   :  { %695 = vmin.xlane.f32.xlu1 %v694_v51 }
 0x21f   :  { %v2176_v25 = vpop.xlane.xlu1 %541 }
 0x220   :  { %vm543_vm14 = vcmp.eq.f32.partialorder %v2698_v35, %v2176_v25 }
 0x221   :  { %v544_v10 = vsel %vm543_vm14, %v539_v46, inf  ;;  %v2187_v32 = vpop.xlane.xlu0 %318  ;;  %v614_v46 = vcvt.s32.f32 %v612_v11 }
 0x222   :  { %545 = vmin.xlane.f32.xlu1 %v544_v10 }
 0x223   :  { %v2181_v61 = vpop.xlane.xlu1 %661 }
 0x224   :  { %vm663_vm15 = vcmp.eq.f32.partialorder %v2699_v56, %v2181_v61 }
 0x225   :  { %v664_v17 = vsel %vm663_vm15, %v659_v39, inf  ;;  %v734_v39 = vcvt.s32.f32 %v732_v3 }
 0x226   :  { %665 = vmin.xlane.f32.xlu1 %v664_v17  ;;  %v627_v17 = vand.u32 65535, %v1953_v1 }
 0x227   :  { %v2193_v12 = vpop.xlane.xlu1 %321 }
 0x228   :  { %2700 = vst [vmem:[#allocation29_spill] sm:$0xff] %v2193_v12 }
 0x22e   :  { %v2189_v63 = vpop.xlane.xlu0 %342 }
 0x22f   :  { %1366 = vlog2.f32 %v2189_v63 }
 0x232   :  { %v2191_v16 = vpop.xlane.xlu0 %858 }
 0x236   :  { %v2195_v6 = vpop.xlane.xlu0 %312 }
 0x238   :  { %v2198_v7 = vpop.xlane.xlu1 %345 }
 0x239   :  { %1368 = vlog2.f32 %v2198_v7 }
 0x23a   :  { %v2200_v51 = vpop.xlane.xlu0 %616  ;;  %1370 = vlog2.f32 %v2195_v6 }
 0x23b   :  { %vm618_vm0 = vcmp.eq.f32.partialorder %v1943_v54, %v2200_v51  ;;  %v582_v54 = vand.u32 65535, %v1960_v23 }
 0x23c   :  { %v2205_v37 = vpop.xlane.xlu1 %873  ;;  %v619_v35 = vsel %vm618_vm0, %v614_v46, inf  ;;  %v629_v46 = vcvt.s32.f32 %v627_v17 }
 0x23d   :  { %620 = vmin.xlane.f32.xlu0 %v619_v35  ;;  %v747_v35 = vand.u32 65535, %v1967_v34  ;;  %v584_v12 = vcvt.s32.f32 %v582_v54  ;;  %v854_v34 = vand.u32 65535, %v1899_v4 }
 0x23e   :  { %v2207_v10 = vpop.xlane.xlu0 %736 }
 0x23f   :  { %vm738_vm2 = vcmp.eq.f32.partialorder %v1957_v2, %v2207_v10  ;;  %v702_v2 = vand.u32 65535, %v1975_v14 }
 0x240   :  { %v2211_v52 = vpop.xlane.xlu1 %315  ;;  %v739_v56 = vsel %vm738_vm2, %v734_v39, inf }
 0x241   :  { %740 = vmin.xlane.f32.xlu1 %v739_v56  ;;  %v749_v56 = vcvt.s32.f32 %v747_v35  ;;  %v704_v17 = vcvt.s32.f32 %v702_v2  ;;  %1372 = vlog2.f32 %v2211_v52 }
 0x242   :  { %v2214_v42 = vpop.xlane.xlu0 %336  ;;  %1374 = vlog2.f32 %v2187_v32 }
 0x244   :  { %v2217_v11 = vpop.xlane.xlu1 %631 }
 0x245   :  { %vm633_vm3 = vcmp.eq.f32.partialorder %v1977_v48, %v2217_v11 }
 0x246   :  { %v2223_v3 = vpop.xlane.xlu0 %586  ;;  %v634_v39 = vsel %vm633_vm3, %v629_v46, inf  ;;  %v2702_v46 = vld [vmem:[#allocation47_spill] sm:$0xff] }
 0x247   :  { %635 = vmin.xlane.f32.xlu1 %v634_v39  ;;  %vm588_vm4 = vcmp.eq.f32.partialorder %v1985_v30, %v2223_v3  ;;  %vm860_vm7 = vcmp.eq.f32.partialorder %v2702_v46, %v2191_v16  ;;  %v856_v39 = vcvt.s32.f32 %v854_v34 }
 0x248   :  { %v2227_v1 = vpop.xlane.xlu1 %751  ;;  %v589_v23 = vsel %vm588_vm4, %v584_v12, inf  ;;  %v597_v12 = vand.u32 65535, %v1998_v31  ;;  %v2705_v31 = vld [vmem:[#allocation51_spill] sm:$0xff] }
 0x249   :  { %590 = vmin.xlane.f32.xlu0 %v589_v23  ;;  %vm753_vm5 = vcmp.eq.f32.partialorder %v1994_v8, %v2227_v1  ;;  %v2703_v8 = vld [vmem:[#allocation33_spill] sm:$0xff]  ;;  %v861_v2 = vsel %vm860_vm7, %v856_v39, inf }
 0x24a   :  { %v2232_v48 = vpop.xlane.xlu0 %706  ;;  %v754_v14 = vsel %vm753_vm5, %v749_v56, inf  ;;  %v884_v35 = vand.u32 65535, %v2703_v8  ;;  %v599_v56 = vcvt.s32.f32 %v597_v12  ;;  %v2706_v8 = vld [vmem:[#allocation49_spill] sm:$0xff]  ;;  %v944_v12 = vand.u32 65535, %v2010_v15 }
 0x24b   :  { %vm708_vm6 = vcmp.eq.f32.partialorder %v2005_v57, %v2232_v48  ;;  %755 = vmin.xlane.f32.xlu1 %v754_v14  ;;  %v2704_v57 = vld [vmem:[#allocation38_spill] sm:$0xff]  ;;  %v914_v14 = vand.u32 65535, %v2705_v31  ;;  %v869_v34 = vand.u32 65535, %v2706_v8  ;;  %v974_v15 = vand.u32 65535, %v2030_v58 }
 0x24c   :  { %v2236_v54 = vpop.xlane.xlu1 %339  ;;  %v709_v30 = vsel %vm708_vm6, %v704_v17, inf  ;;  %vm890_vm8 = vcmp.eq.f32.partialorder %v2704_v57, %v2183_v18  ;;  %v886_v46 = vcvt.s32.f32 %v884_v35  ;;  %v2707_v57 = vld [vmem:[#allocation50_spill] sm:$0xff]  ;;  %v2708_v35 = vld [vmem:[#allocation53_spill] sm:$0xff]  ;;  %v946_v8 = vcvt.s32.f32 %v944_v12 }
 0x24d   :  { %2701 = vst [vmem:[#allocation31_spill] sm:$0xff] %v2236_v54  ;;  %710 = vmin.xlane.f32.xlu0 %v709_v30  ;;  %vm875_vm11 = vcmp.eq.f32.partialorder %v2707_v57, %v2205_v37  ;;  %v976_v12 = vcvt.s32.f32 %v974_v15 }
 0x24e   :  { %v2242_v4 = vpop.xlane.xlu0 %918  ;;  %v891_v39 = vsel %vm890_vm8, %v886_v46, inf  ;;  %v871_v46 = vcvt.s32.f32 %v869_v34 }
 0x24f   :  { %vm920_vm10 = vcmp.eq.f32.partialorder %v2025_v26, %v2242_v4 }
 0x250   :  { %v2244_v23 = vpop.xlane.xlu1 %601 }
 0x251   :  { %862 = vmin.xlane.f32.xlu0 %v861_v2  ;;  %vm603_vm9 = vcmp.eq.f32.partialorder %v2035_v60, %v2244_v23  ;;  %v916_v60 = vcvt.s32.f32 %v914_v14  ;;  %v876_v14 = vsel %vm875_vm11, %v871_v46, inf }
 0x252   :  { %v2251_v17 = vpop.xlane.xlu0 %948  ;;  %v604_v30 = vsel %vm603_vm9, %v599_v56, inf  ;;  %v899_v56 = vand.u32 65535, %v2708_v35 }
 0x253   :  { %605 = vmin.xlane.f32.xlu1 %v604_v30  ;;  %v921_v30 = vsel %vm920_vm10, %v916_v60, inf  ;;  %vm950_vm12 = vcmp.eq.f32.partialorder %v2047_v53, %v2251_v17  ;;  %v1004_v53 = vand.u32 65535, %v2075_v59 }
 0x254   :  { %v2254_v54 = vpop.xlane.xlu1 %903  ;;  %v951_v60 = vsel %vm950_vm12, %v946_v8, inf  ;;  %v901_v34 = vcvt.s32.f32 %v899_v56  ;;  %v959_v56 = vand.u32 65535, %v2065_v43 }
 0x255   :  { %892 = vmin.xlane.f32.xlu0 %v891_v39  ;;  %vm905_vm13 = vcmp.eq.f32.partialorder %v2058_v21, %v2254_v54  ;;  %v929_v21 = vand.u32 65535, %v2040_v28  ;;  %v1006_v59 = vcvt.s32.f32 %v1004_v53 }
 0x256   :  { %v2259_v2 = vpop.xlane.xlu0 %978  ;;  %v906_v57 = vsel %vm905_vm13, %v901_v34, inf }
 0x257   :  { %847 = vmin.xlane.f32.xlu1 %v2147_v47  ;;  %v717_v47 = vand.u32 65535, %v2086_v27  ;;  %vm980_vm14 = vcmp.eq.f32.partialorder %v2069_v41, %v2259_v2  ;;  %v931_v46 = vcvt.s32.f32 %v929_v21 }
 0x258   :  { %v2265_v31 = vpop.xlane.xlu1 %933  ;;  %v981_v27 = vsel %vm980_vm14, %v976_v12, inf }
 0x259   :  { %922 = vmin.xlane.f32.xlu0 %v921_v30  ;;  %v719_v30 = vcvt.s32.f32 %v717_v47  ;;  %vm935_vm2 = vcmp.eq.f32.partialorder %v2080_v13, %v2265_v31  ;;  %v1019_v13 = vand.u32 65535, %v2100_v19 }
 0x25a   :  { %v2270_v26 = vpop.xlane.xlu0 %993  ;;  %v936_v15 = vsel %vm935_vm2, %v931_v46, inf }
 0x25b   :  { %877 = vmin.xlane.f32.xlu1 %v876_v14  ;;  %vm995_vm4 = vcmp.eq.f32.partialorder %v2089_v5, %v2270_v26 }
 0x25c   :  { %v2275_v39 = vpop.xlane.xlu1 %963 }
 0x25d   :  { %952 = vmin.xlane.f32.xlu0 %v951_v60  ;;  %vm965_vm3 = vcmp.eq.f32.partialorder %v2096_v45, %v2275_v39  ;;  %v1021_v45 = vcvt.s32.f32 %v1019_v13 }
 0x25e   :  { %v2280_v58 = vpop.xlane.xlu0 %1008 }
 0x25f   :  { %907 = vmin.xlane.f32.xlu1 %v906_v57  ;;  %vm1010_vm15 = vcmp.eq.f32.partialorder %v2103_v33, %v2280_v58  ;;  %v2709_v33 = vld [vmem:[#allocation54_spill] sm:$0xff] }
 0x260   :  { %v2283_v35 = vpop.xlane.xlu1 %721  ;;  %v1011_v28 = vsel %vm1010_vm15, %v1006_v59, inf  ;;  %v989_v14 = vand.u32 65535, %v2709_v33  ;;  %v563_v59 = vcvt.f32.s32 %v2135_v20  ;;  %v820_v20 = vcvt.f32.s32 %v2157_v44  ;;  %v2712_v44 = vld [vmem:[#allocation10_spill] sm:$0xff] }
 0x261   :  { %vm723_vm0 = vcmp.eq.f32.partialorder %v2108_v9, %v2283_v35  ;;  %982 = vmin.xlane.f32.xlu0 %v981_v27  ;;  %v961_v9 = vcvt.s32.f32 %v959_v56  ;;  %v805_v27 = vcvt.f32.s32 %v2129_v40 }
 0x262   :  { %v724_v41 = vsel %vm723_vm0, %v719_v30, inf  ;;  %v991_v43 = vcvt.s32.f32 %v989_v14  ;;  %v2302_v53 = vpop.xlane.xlu0 %330  ;;  %v564_v33 = vshll.u32 %v563_v59, 16  ;;  %v683_v14 = vcvt.f32.s32 %v2144_v0 }
 0x263   :  { %725 = vmin.xlane.f32.xlu1 %v724_v41  ;;  %v966_v8 = vsel %vm965_vm3, %v961_v9, inf  ;;  %v806_v41 = vshll.u32 %v805_v27, 16 }
 0x264   :  { %v2298_v47 = vpop.xlane.xlu1 %1023  ;;  %v996_v60 = vsel %vm995_vm4, %v991_v43, inf  ;;  %v684_v40 = vshll.u32 %v683_v14, 16  ;;  %v533_v43 = vcvt.f32.s32 %v2152_v50 }
 0x265   :  { %1012 = vmin.xlane.f32.xlu0 %v1011_v28  ;;  %vm1025_vm5 = vcmp.eq.f32.partialorder %v2113_v22, %v2298_v47 }
 0x266   :  { %v1026_v34 = vsel %vm1025_vm5, %v1021_v45, inf  ;;  %v2304_v57 = vpop.xlane.xlu0 %354  ;;  %v534_v59 = vshll.u32 %v533_v43, 16 }
 0x267   :  { %937 = vmin.xlane.f32.xlu1 %v936_v15 }
 0x268   :  { %v2308_v5 = vpop.xlane.xlu1 %333 }
 0x26a   :  { %v2306_v12 = vpop.xlane.xlu0 %324 }
 0x26b   :  { %967 = vmin.xlane.f32.xlu1 %v966_v8 }
 0x26c   :  { %v2315_v30 = vpop.xlane.xlu1 %357 }
 0x26d   :  { %2710 = vst [vmem:[#allocation32_spill] sm:$0xff] %v2315_v30 }
 0x26e   :  { %v2310_v19 = vpop.xlane.xlu0 %348 }
 0x26f   :  { %997 = vmin.xlane.f32.xlu1 %v996_v60 }
 0x270   :  { %v2320_v46 = vpop.xlane.xlu1 %327 }
 0x273   :  { %1027 = vmin.xlane.f32.xlu1 %v1026_v34  ;;  %v2711_v34 = vld [vmem:[#allocation9_spill] sm:$0xff] }
 0x274   :  { %v2329_v45 = vpop.xlane.xlu1 %351 }
 0x291   :  { %v2312_v21 = vpop.xlane.xlu0 %832 }
 0x292   :  { %v834_v63 = vcvt.f32.s32 %v2312_v21 }
 0x295   :  { %v803_v22 = vpop.xlane.xlu0 %802 }
 0x296   :  { %v804_v56 = vcvt.f32.s32 %v803_v22 }
 0x298   :  { %v2318_v28 = vadd.s32 %v806_v41, %v804_v56  ;;  %v653_v56 = vcvt.f32.s32 %v2162_v38 }
 0x299   :  { %v561_v15 = vpop.xlane.xlu0 %560 }
 0x29a   :  { %v562_v9 = vcvt.f32.s32 %v561_v15  ;;  %v821_v15 = vshll.u32 %v820_v20, 16  ;;  %v654_v43 = vshll.u32 %v653_v56, 16  ;;  %v698_v20 = vcvt.f32.s32 %v2171_v24 }
 0x29b   :  { %v548_v24 = vcvt.f32.s32 %v2176_v25  ;;  %v2716_v25 = vld [vmem:[#allocation14_spill] sm:$0xff] }
 0x29c   :  { %v2323_v8 = vadd.s32 %v564_v33, %v562_v9  ;;  %v578_v9 = vcvt.f32.s32 %v2166_v55  ;;  %v699_v56 = vshll.u32 %v698_v20, 16 }
 0x29d   :  { %v681_v13 = vpop.xlane.xlu0 %680 }
 0x29e   :  { %v682_v60 = vcvt.f32.s32 %v681_v13  ;;  %vm1035_vm6 = vcmp.eq.s32.totalorder %v1731_v49, %v2323_v8  ;;  %v579_v55 = vshll.u32 %v578_v9, 16 }
 0x29f   :  { %v1051_v27 = vsel %vm1035_vm6, %v2711_v34, 0.0 }
 0x2a0   :  { %v2332_v22 = vadd.s32 %v684_v40, %v682_v60  ;;  %v1071_v0 = vsel %vm214_vm1, %v1051_v27, 0.0 }
 0x2a1   :  { %1072 = vadd.xlane.f32.xlu0 %v1071_v0  ;;  %v531_v41 = vpop.xlane.xlu0 %530 }
 0x2a2   :  { %v532_v50 = vcvt.f32.s32 %v531_v41  ;;  %vm1043_vm7 = vcmp.eq.s32.totalorder %v1731_v49, %v2332_v22  ;;  %v2713_v41 = vld [vmem:[#allocation11_spill] sm:$0xff] }
 0x2a3   :  { %v818_v33 = vpop.xlane.xlu1 %817  ;;  %v1059_v14 = vsel %vm1043_vm7, %v2712_v44, 0.0 }
 0x2a4   :  { %v2340_v13 = vadd.s32 %v534_v59, %v532_v50  ;;  %v819_v40 = vcvt.f32.s32 %v818_v33  ;;  %v1095_v60 = vsel %vm214_vm1, %v1059_v14, 0.0 }
 0x2a5   :  { %1096 = vadd.xlane.f32.xlu0 %v1095_v60  ;;  %v651_v34 = vpop.xlane.xlu0 %650 }
 0x2a6   :  { %v2343_v27 = vadd.s32 %v821_v15, %v819_v40  ;;  %v652_v38 = vcvt.f32.s32 %v651_v34  ;;  %vm1033_vm8 = vcmp.eq.s32.totalorder %v1731_v49, %v2340_v13  ;;  %v2714_v40 = vld [vmem:[#allocation12_spill] sm:$0xff] }
 0x2a7   :  { %v576_v0 = vpop.xlane.xlu1 %575  ;;  %v1049_v44 = vsel %vm1033_vm8, %v2713_v41, 0.0 }
 0x2a8   :  { %v2349_v59 = vadd.s32 %v654_v43, %v652_v38  ;;  %v577_v50 = vcvt.f32.s32 %v576_v0  ;;  %v1065_v33 = vsel %vm214_vm1, %v1049_v44, 0.0  ;;  %v2715_v43 = vld [vmem:[#allocation13_spill] sm:$0xff]  ;;  %v549_v44 = vshll.u32 %v548_v24, 16  ;;  %v2717_v24 = vld [vmem:[#allocation15_spill] sm:$0xff] }
 0x2a9   :  { %1066 = vadd.xlane.f32.xlu0 %v1065_v33 }
 0x2aa   :  { %v2352_v14 = vadd.s32 %v579_v55, %v577_v50  ;;  %vm1041_vm9 = vcmp.eq.s32.totalorder %v1731_v49, %v2349_v59  ;;  %v668_v55 = vcvt.f32.s32 %v2181_v61 }
 0x2ab   :  { %v696_v15 = vpop.xlane.xlu1 %695  ;;  %v1057_v60 = vsel %vm1041_vm9, %v2714_v40, 0.0 }
 0x2ac   :  { %v697_v34 = vcvt.f32.s32 %v696_v15  ;;  %v1089_v9 = vsel %vm214_vm1, %v1057_v60, 0.0  ;;  %vm1036_vm10 = vcmp.eq.s32.totalorder %v1731_v49, %v2352_v14  ;;  %v669_v60 = vshll.u32 %v668_v55, 16 }
 0x2ad   :  { %1090 = vadd.xlane.f32.xlu0 %v1089_v9  ;;  %v1052_v38 = vsel %vm1036_vm10, %v2715_v43, 0.0 }
 0x2ae   :  { %v2362_v0 = vadd.s32 %v699_v56, %v697_v34  ;;  %v1074_v41 = vsel %vm214_vm1, %v1052_v38, 0.0  ;;  %v2718_v38 = vld [vmem:[#allocation16_spill] sm:$0xff] }
 0x2af   :  { %1075 = vadd.xlane.f32.xlu1 %v1074_v41  ;;  %v546_v20 = vpop.xlane.xlu1 %545 }
 0x2b0   :  { %v547_v50 = vcvt.f32.s32 %v546_v20  ;;  %vm1044_vm11 = vcmp.eq.s32.totalorder %v1731_v49, %v2362_v0 }
 0x2b1   :  { %v1060_v33 = vsel %vm1044_vm11, %v2716_v25, 0.0  ;;  %v743_v25 = vcvt.f32.s32 %v2207_v10  ;;  %v593_v10 = vcvt.f32.s32 %v2223_v3 }
 0x2b2   :  { %v2369_v15 = vadd.s32 %v549_v44, %v547_v50  ;;  %v1098_v40 = vsel %vm214_vm1, %v1060_v33, 0.0  ;;  %v623_v44 = vcvt.f32.s32 %v2200_v51 }
 0x2b3   :  { %1099 = vadd.xlane.f32.xlu1 %v1098_v40  ;;  %v666_v56 = vpop.xlane.xlu1 %665 }
 0x2b4   :  { %v667_v34 = vcvt.f32.s32 %v666_v56  ;;  %vm1034_vm12 = vcmp.eq.s32.totalorder %v1731_v49, %v2369_v15  ;;  %v624_v50 = vshll.u32 %v623_v44, 16 }
 0x2b5   :  { %v1050_v9 = vsel %vm1034_vm12, %v2717_v24, 0.0  ;;  %v2719_v24 = vld [vmem:[#allocation17_spill] sm:$0xff] }
 0x2b6   :  { %v2375_v61 = vadd.s32 %v669_v60, %v667_v34  ;;  %v1068_v43 = vsel %vm214_vm1, %v1050_v9, 0.0  ;;  %v744_v60 = vshll.u32 %v743_v25, 16 }
 0x2b7   :  { %1069 = vadd.xlane.f32.xlu1 %v1068_v43  ;;  %v638_v43 = vcvt.f32.s32 %v2217_v11  ;;  %v713_v11 = vcvt.f32.s32 %v2232_v48 }
 0x2b8   :  { %vm1042_vm13 = vcmp.eq.s32.totalorder %v1731_v49, %v2375_v61 }
 0x2b9   :  { %v1058_v41 = vsel %vm1042_vm13, %v2718_v38, 0.0 }
 0x2ba   :  { %v1092_v20 = vsel %vm214_vm1, %v1058_v41, 0.0 }
 0x2bb   :  { %1093 = vadd.xlane.f32.xlu1 %v1092_v20  ;;  %v2720_v20 = vld [vmem:[#allocation18_spill] sm:$0xff] }
 0x2ca   :  { %v621_v55 = vpop.xlane.xlu0 %620 }
 0x2cb   :  { %v622_v33 = vcvt.f32.s32 %v621_v55  ;;  %v639_v55 = vshll.u32 %v638_v43, 16 }
 0x2cd   :  { %v2384_v40 = vadd.s32 %v624_v50, %v622_v33  ;;  %v758_v50 = vcvt.f32.s32 %v2227_v1  ;;  %v714_v1 = vshll.u32 %v713_v11, 16 }
 0x2ce   :  { %v741_v56 = vpop.xlane.xlu1 %740 }
 0x2cf   :  { %v742_v34 = vcvt.f32.s32 %v741_v56  ;;  %vm1039_vm14 = vcmp.eq.s32.totalorder %v1731_v49, %v2384_v40 }
 0x2d0   :  { %v1055_v9 = vsel %vm1039_vm14, %v2719_v24, 0.0 }
 0x2d1   :  { %v2390_v38 = vadd.s32 %v744_v60, %v742_v34  ;;  %v1083_v51 = vsel %vm214_vm1, %v1055_v9, 0.0  ;;  %v594_v60 = vshll.u32 %v593_v10, 16  ;;  %v759_v9 = vshll.u32 %v758_v50, 16 }
 0x2d2   :  { %1084 = vadd.xlane.f32.xlu0 %v1083_v51 }
 0x2d3   :  { %vm1047_vm15 = vcmp.eq.s32.totalorder %v1731_v49, %v2390_v38 }
 0x2d4   :  { %v636_v41 = vpop.xlane.xlu1 %635  ;;  %v1063_v44 = vsel %vm1047_vm15, %v2720_v20, 0.0 }
 0x2d5   :  { %v637_v25 = vcvt.f32.s32 %v636_v41  ;;  %v1107_v33 = vsel %vm214_vm1, %v1063_v44, 0.0  ;;  %v2721_v41 = vld [vmem:[#allocation21_spill] sm:$0xff] }
 0x2d6   :  { %v591_v56 = vpop.xlane.xlu0 %590  ;;  %1108 = vadd.xlane.f32.xlu0 %v1107_v33 }
 0x2d7   :  { %v2400_v34 = vadd.s32 %v639_v55, %v637_v25  ;;  %v592_v3 = vcvt.f32.s32 %v591_v56  ;;  %v2722_v55 = vld [vmem:[#allocation19_spill] sm:$0xff]  ;;  %v608_v25 = vcvt.f32.s32 %v2244_v23  ;;  %v850_v23 = vcvt.f32.s32 %v2140_v62 }
 0x2d8   :  { %v756_v24 = vpop.xlane.xlu1 %755 }
 0x2d9   :  { %v2402_v51 = vadd.s32 %v594_v60, %v592_v3  ;;  %v757_v30 = vcvt.f32.s32 %v756_v24  ;;  %vm1040_vm0 = vcmp.eq.s32.totalorder %v1731_v49, %v2400_v34  ;;  %v2723_v3 = vld [vmem:[#allocation20_spill] sm:$0xff] }
 0x2da   :  { %v711_v43 = vpop.xlane.xlu0 %710  ;;  %v1056_v20 = vsel %vm1040_vm0, %v2721_v41, 0.0 }
 0x2db   :  { %v2407_v44 = vadd.s32 %v759_v9, %v757_v30  ;;  %v712_v48 = vcvt.f32.s32 %v711_v43  ;;  %v1086_v10 = vsel %vm214_vm1, %v1056_v20, 0.0  ;;  %vm1037_vm2 = vcmp.eq.s32.totalorder %v1731_v49, %v2402_v51 }
 0x2dc   :  { %1087 = vadd.xlane.f32.xlu1 %v1086_v10  ;;  %v1053_v50 = vsel %vm1037_vm2, %v2722_v55, 0.0  ;;  %v609_v9 = vshll.u32 %v608_v25, 16  ;;  %v2724_v55 = vld [vmem:[#allocation22_spill] sm:$0xff] }
 0x2dd   :  { %v2414_v33 = vadd.s32 %v714_v1, %v712_v48  ;;  %v1077_v11 = vsel %vm214_vm1, %v1053_v50, 0.0  ;;  %vm1048_vm3 = vcmp.eq.s32.totalorder %v1731_v49, %v2407_v44  ;;  %v851_v48 = vshll.u32 %v850_v23, 16 }
 0x2de   :  { %1078 = vadd.xlane.f32.xlu0 %v1077_v11  ;;  %v1064_v30 = vsel %vm1048_vm3, %v1599_v36, 0.0  ;;  %v880_v36 = vcvt.f32.s32 %v2205_v37  ;;  %v728_v37 = vcvt.f32.s32 %v2283_v35 }
 0x2df   :  { %v1110_v56 = vsel %vm214_vm1, %v1064_v30, 0.0  ;;  %vm1045_vm4 = vcmp.eq.s32.totalorder %v1731_v49, %v2414_v33 }
 0x2e0   :  { %1111 = vadd.xlane.f32.xlu1 %v1110_v56  ;;  %v606_v60 = vpop.xlane.xlu1 %605  ;;  %v1061_v24 = vsel %vm1045_vm4, %v2723_v3, 0.0  ;;  %v881_v25 = vshll.u32 %v880_v36, 16  ;;  %v910_v56 = vcvt.f32.s32 %v2254_v54  ;;  %v2725_v36 = vld [vmem:[#allocation23_spill] sm:$0xff] }
 0x2e1   :  { %v607_v1 = vcvt.f32.s32 %v606_v60  ;;  %v1101_v43 = vsel %vm214_vm1, %v1061_v24, 0.0 }
 0x2e2   :  { %1102 = vadd.xlane.f32.xlu0 %v1101_v43  ;;  %v911_v23 = vshll.u32 %v910_v56, 16 }
 0x2e3   :  { %v610_v41 = vadd.s32 %v609_v9, %v607_v1 }
 0x2e4   :  { %v848_v20 = vpop.xlane.xlu1 %847 }
 0x2e5   :  { %v849_v10 = vcvt.f32.s32 %v848_v20  ;;  %vm1038_vm5 = vcmp.eq.s32.totalorder %v1731_v49, %v610_v41  ;;  %v729_v20 = vshll.u32 %v728_v37, 16 }
 0x2e6   :  { %v1054_v50 = vsel %vm1038_vm5, %v2724_v55, 0.0 }
 0x2e7   :  { %v852_v11 = vadd.s32 %v851_v48, %v849_v10  ;;  %v1080_v30 = vsel %vm214_vm1, %v1054_v50, 0.0  ;;  %v863_v50 = vpop.xlane.xlu0 %862 }
 0x2e8   :  { %1081 = vadd.xlane.f32.xlu1 %v1080_v30  ;;  %v878_v62 = vpop.xlane.xlu1 %877  ;;  %v864_v21 = vcvt.f32.s32 %v863_v50 }
 0x2e9   :  { %v879_v60 = vcvt.f32.s32 %v878_v62 }
 0x2eb   :  { %v2431_v3 = vadd.s32 %v881_v25, %v879_v60  ;;  %v893_v35 = vpop.xlane.xlu0 %892 }
 0x2ec   :  { %v908_v24 = vpop.xlane.xlu1 %907 }
 0x2ed   :  { %v909_v9 = vcvt.f32.s32 %v908_v24  ;;  %v865_v24 = vcvt.f32.s32 %v2191_v16 }
 0x2ef   :  { %v2434_v1 = vadd.s32 %v911_v23, %v909_v9  ;;  %v2445_v30 = vpop.xlane.xlu0 %922  ;;  %v895_v9 = vcvt.f32.s32 %v2183_v18 }
 0x2f0   :  { %v726_v43 = vpop.xlane.xlu1 %725 }
 0x2f1   :  { %v727_v48 = vcvt.f32.s32 %v726_v43 }
 0x2f3   :  { %v2436_v10 = vadd.s32 %v729_v20, %v727_v48  ;;  %v2448_v62 = vpop.xlane.xlu0 %952  ;;  %v896_v20 = vshll.u32 %v895_v9, 16  ;;  %v925_v48 = vcvt.f32.s32 %v2242_v4  ;;  %v985_v9 = vcvt.f32.s32 %v2259_v2 }
 0x2f4   :  { %v2454_v25 = vpop.xlane.xlu1 %937 }
 0x2f5   :  { %vm1046_vm6 = vcmp.eq.s32.totalorder %v1731_v49, %v2436_v10  ;;  %v939_v4 = vcvt.f32.s32 %v2454_v25  ;;  %v970_v25 = vcvt.f32.s32 %v2275_v39 }
 0x2f6   :  { %v1062_v54 = vsel %vm1046_vm6, %v2725_v36, 0.0 }
 0x2f7   :  { %v1104_v55 = vsel %vm214_vm1, %v1062_v54, 0.0  ;;  %v2452_v49 = vpop.xlane.xlu0 %982  ;;  %v926_v54 = vshll.u32 %v925_v48, 16  ;;  %v1000_v48 = vcvt.f32.s32 %v2270_v26 }
 0x2f8   :  { %1105 = vadd.xlane.f32.xlu1 %v1104_v55  ;;  %v940_v55 = vcvt.f32.s32 %v2265_v31  ;;  %v954_v31 = vcvt.f32.s32 %v2448_v62  ;;  %v971_v62 = vshll.u32 %v970_v25, 16 }
 0x30f   :  { %1129 = vxpose.xlu0.b32.start [1/16] (narrow) %v2340_v13, 8  ;;  %v1367_v13 = vpop.eup %1366 }
 0x313   :  { %1130 = vxpose.xlu0.b32.cont [2/16] (narrow) %v2369_v15, 8  ;;  %v2457_v15 = vpop.xlane.xlu0 %1012 }
 0x317   :  { %1131 = vxpose.xlu0.b32.cont [3/16] (narrow) %v2323_v8, 8  ;;  %v835_v8 = vcvt.f32.s32 %v2124_v29  ;;  %v2726_v29 = vld [vmem:[#allocation39_spill] sm:$0xff] }
 0x319   :  { %v836_v56 = vshll.u32 %v835_v8, 16  ;;  %v941_v8 = vshll.u32 %v940_v55, 16 }
 0x31b   :  { %1132 = vxpose.xlu0.b32.cont [4/16] (narrow) %v2352_v14, 8  ;;  %v2462_v14 = vpop.xlane.xlu1 %967 }
 0x31f   :  { %1133 = vxpose.xlu0.b32.cont [5/16] (narrow) %v2402_v51, 8  ;;  %v380_v51 = vmul.f32 0.6931472, %v1367_v13  ;;  %v955_v13 = vcvt.f32.s32 %v2251_v17 }
 0x321   :  { %v2471_v60 = vadd.f32 %v380_v51, %v2726_v29  ;;  %v956_v29 = vshll.u32 %v955_v13, 16  ;;  %v2733_v13 = vld [vmem:[#allocation34_spill] sm:$0xff] }
 0x323   :  { %1134 = vxpose.xlu0.b32.cont [6/16] (narrow) %v610_v41, 8 }
 0x327   :  { %1135 = vxpose.xlu0.b32.cont [7/16] (narrow) %v2384_v40, 8  ;;  %v837_v40 = vadd.s32 %v836_v56, %v834_v63 }
 0x32b   :  { %1136 = vxpose.xlu0.b32.cont [8/16] (narrow) %v2400_v34, 8  ;;  %1162 = vxpose.xlu1.b32.start [1/16] (narrow) %v2318_v28, 8  ;;  %v2473_v34 = vpop.xlane.xlu1 %997 }
 0x32e   :  { %v2466_v41 = vpop.xlane.xlu0 %1072 }
 0x32f   :  { %1137 = vxpose.xlu0.b32.cont [9/16] (narrow) %v2349_v59, 8  ;;  %1163 = vxpose.xlu1.b32.cont [2/16] (narrow) %v2343_v27, 8  ;;  %v866_v59 = vshll.u32 %v865_v24, 16  ;;  %v1369_v27 = vpop.eup %1368  ;;  %v2482_v23 = vpop.xlane.xlu1 %1027  ;;  %v2730_v24 = vld [vmem:[#allocation28_spill] sm:$0xff] }
 0x330   :  { %v382_v16 = vmul.f32 0.6931472, %v1369_v27  ;;  %v1371_v52 = vpop.eup %1370  ;;  %v969_v27 = vcvt.f32.s32 %v2462_v14  ;;  %v999_v14 = vcvt.f32.s32 %v2473_v34 }
 0x331   :  { %v867_v37 = vadd.s32 %v866_v59, %v864_v21  ;;  %v360_v36 = vmul.f32 0.6931472, %v1371_v52  ;;  %v1373_v50 = vpop.eup %1372  ;;  %v957_v59 = vadd.s32 %v956_v29, %v954_v31  ;;  %v2732_v52 = vld [vmem:[#allocation27_spill] sm:$0xff] }
 0x332   :  { %v2475_v28 = vpop.xlane.xlu0 %1096  ;;  %v1375_v63 = vpop.eup %1374  ;;  %v972_v39 = vadd.s32 %v971_v62, %v969_v27 }
 0x333   :  { %v1123_v7 = vsub.f32 %v2475_v28, %v2471_v60  ;;  %1138 = vxpose.xlu0.b32.cont [10/16] (narrow) %v2375_v61, 8  ;;  %1164 = vxpose.xlu1.b32.cont [3/16] (narrow) %v837_v40, 8  ;;  %v894_v61 = vcvt.f32.s32 %v893_v35  ;;  %v364_v40 = vmul.f32 0.6931472, %v1375_v63 }
 0x335   :  { %v897_v18 = vadd.s32 %v896_v20, %v894_v61  ;;  %v984_v20 = vcvt.f32.s32 %v2452_v49  ;;  %v1015_v49 = vcvt.f32.s32 %v2280_v58 }
 0x336   :  { %v1067_v35 = vpop.xlane.xlu0 %1066 }
 0x337   :  { %1139 = vxpose.xlu0.b32.cont [11/16] (narrow) %v2332_v22, 8  ;;  %1165 = vxpose.xlu1.b32.cont [4/16] (narrow) %v852_v11, 8  ;;  %v2727_v22 = vld [vmem:[#allocation44_spill] sm:$0xff]  ;;  %v1016_v55 = vshll.u32 %v1015_v49, 16 }
 0x338   :  { %v2493_v11 = vadd.f32 %v382_v16, %v2727_v22  ;;  %v2731_v16 = vld [vmem:[#allocation24_spill] sm:$0xff] }
 0x339   :  { %v393_v61 = vadd.f32 %v364_v40, %v2731_v16  ;;  %v2738_v16 = vld [vmem:[#allocation26_spill] sm:$0xff] }
 0x33a   :  { %v1091_v26 = vpop.xlane.xlu0 %1090 }
 0x33b   :  { %1140 = vxpose.xlu0.b32.cont [12/16] (narrow) %v2362_v0, 8  ;;  %1166 = vxpose.xlu1.b32.cont [5/16] (narrow) %v867_v37, 8  ;;  %v1115_v22 = vsub.f32 %v2466_v41, %v393_v61  ;;  %v1014_v41 = vcvt.f32.s32 %v2457_v15 }
 0x33c   :  { %v2487_v43 = vpop.xlane.xlu1 %1075 }
 0x33f   :  { %1141 = vxpose.xlu0.b32.cont [13/16] (narrow) %v2414_v33, 8  ;;  %1167 = vxpose.xlu1.b32.cont [6/16] (narrow) %v2431_v3, 8  ;;  %v924_v33 = vcvt.f32.s32 %v2445_v30  ;;  %v2728_v3 = vld [vmem:[#allocation29_spill] sm:$0xff] }
 0x340   :  { %v2495_v6 = vpop.xlane.xlu1 %1099  ;;  %1376 = vlog2.f32 %v2728_v3  ;;  %v2729_v30 = vld [vmem:[#allocation25_spill] sm:$0xff] }
 0x341   :  { %v1124_v0 = vsub.f32 %v2495_v6, %v2493_v11  ;;  %v927_v32 = vadd.s32 %v926_v54, %v924_v33  ;;  %v391_v51 = vadd.f32 %v360_v36, %v2729_v30  ;;  %1378 = vlog2.f32 %v2306_v12 }
 0x342   :  { %v1001_v36 = vshll.u32 %v1000_v48, 16  ;;  %v1029_v12 = vcvt.f32.s32 %v2482_v23  ;;  %1380 = vlog2.f32 %v2320_v46 }
 0x343   :  { %1142 = vxpose.xlu0.b32.cont [14/16] (narrow) %v2436_v10, 8  ;;  %1168 = vxpose.xlu1.b32.cont [7/16] (narrow) %v897_v18, 8  ;;  %v362_v10 = vmul.f32 0.6931472, %v1373_v50  ;;  %v1113_v56 = vsub.f32 %v1067_v35, %v391_v51  ;;  %v986_v18 = vshll.u32 %v985_v9, 16  ;;  %v1030_v50 = vcvt.f32.s32 %v2298_v47 }
 0x344   :  { %v1002_v54 = vadd.s32 %v1001_v36, %v999_v14  ;;  %1382 = vlog2.f32 %v2302_v53  ;;  %v2734_v53 = vld [vmem:[#allocation31_spill] sm:$0xff] }
 0x345   :  { %v392_v21 = vadd.f32 %v362_v10, %v2730_v24  ;;  %v987_v2 = vadd.s32 %v986_v18, %v984_v20  ;;  %v1031_v35 = vshll.u32 %v1030_v50, 16  ;;  %1384 = vlog2.f32 %v2308_v5  ;;  %v2736_v24 = vld [vmem:[#allocation30_spill] sm:$0xff] }
 0x346   :  { %1386 = vlog2.f32 %v2214_v42  ;;  %v2737_v42 = vld [vmem:[#allocation37_spill] sm:$0xff] }
 0x347   :  { %1143 = vxpose.xlu0.b32.cont [15/16] (narrow) %v2390_v38, 8  ;;  %1169 = vxpose.xlu1.b32.cont [8/16] (narrow) %v2434_v1, 8  ;;  %v942_v38 = vadd.s32 %v941_v8, %v939_v4  ;;  %v1070_v1 = vpop.xlane.xlu1 %1069  ;;  %v1032_v58 = vadd.s32 %v1031_v35, %v1029_v12  ;;  %1388 = vlog2.f32 %v2734_v53 }
 0x348   :  { %1390 = vlog2.f32 %v2310_v19 }
 0x349   :  { %1392 = vlog2.f32 %v2329_v45 }
 0x34a   :  { %v1377_v17 = vpop.eup %1376  ;;  %1394 = vlog2.f32 %v2304_v57 }
 0x34b   :  { %1144 = vxpose.xlu0.b32.end [16/16] (narrow) %v2407_v44, 8  ;;  %1170 = vxpose.xlu1.b32.cont [9/16] (narrow) %v927_v32, 8  ;;  %v1114_v44 = vsub.f32 %v1070_v1, %v392_v21  ;;  %v366_v37 = vmul.f32 0.6931472, %v1377_v17  ;;  %v1017_v32 = vadd.s32 %v1016_v55, %v1014_v41  ;;  %v1379_v34 = vpop.eup %1378  ;;  %v1094_v15 = vpop.xlane.xlu1 %1093 }
 0x34c   :  { %v1381_v51 = vpop.eup %1380 }
 0x34d   :  { %v394_v33 = vadd.f32 %v366_v37, %v2732_v52  ;;  %v370_v46 = vmul.f32 0.6931472, %v1381_v51  ;;  %v2740_v52 = vld [vmem:[#allocation32_spill] sm:$0xff] }
 0x34e   :  { %v1383_v63 = vpop.eup %1382  ;;  %1396 = vlog2.f32 %v2740_v52 }
 0x34f   :  { %1195 = vxpose.xlu0.b32.start [1/16] (narrow) %v1113_v56, 8  ;;  %1171 = vxpose.xlu1.b32.cont [10/16] (narrow) %v942_v38, 8  ;;  %v1116_v3 = vsub.f32 %v2487_v43, %v394_v33  ;;  %v368_v43 = vmul.f32 0.6931472, %v1379_v34  ;;  %v372_v38 = vmul.f32 0.6931472, %v1383_v63  ;;  %v1385_v40 = vpop.eup %1384 }
 0x350   :  { %v2735_v56 = vld [vmem:[#allocation48_spill] sm:$0xff]  ;;  %v374_v5 = vmul.f32 0.6931472, %v1385_v40  ;;  %v1387_v17 = vpop.eup %1386 }
 0x351   :  { %v395_v47 = vadd.f32 %v368_v43, %v2733_v13  ;;  %v396_v1 = vadd.f32 %v370_v46, %v2735_v56  ;;  %v397_v21 = vadd.f32 %v372_v38, %v2736_v24  ;;  %v376_v27 = vmul.f32 0.6931472, %v1387_v17  ;;  %v1389_v37 = vpop.eup %1388 }
 0x352   :  { %v378_v62 = vmul.f32 0.6931472, %v1389_v37  ;;  %v1391_v48 = vpop.eup %1390 }
 0x353   :  { %1172 = vxpose.xlu1.b32.cont [11/16] (narrow) %v957_v59, 8  ;;  %1196 = vxpose.xlu0.b32.cont [2/16] (narrow) %v1114_v44, 8  ;;  %v398_v44 = vadd.f32 %v374_v5, %v2737_v42  ;;  %v399_v61 = vadd.f32 %v376_v27, %v2738_v16  ;;  %v384_v19 = vmul.f32 0.6931472, %v1391_v48 }
 0x355   :  { %v1121_v20 = vsub.f32 %v1091_v26, %v399_v61 }
 0x357   :  { %1173 = vxpose.xlu1.b32.cont [12/16] (narrow) %v972_v39, 8  ;;  %1197 = vxpose.xlu0.b32.cont [3/16] (narrow) %v1115_v22, 8  ;;  %v2739_v39 = vld [vmem:[#allocation42_spill] sm:$0xff] }
 0x358   :  { %v400_v22 = vadd.f32 %v378_v62, %v2739_v39 }
 0x35a   :  { %v1122_v18 = vsub.f32 %v1094_v15, %v400_v22 }
 0x35b   :  { %1174 = vxpose.xlu1.b32.cont [13/16] (narrow) %v987_v2, 8  ;;  %1198 = vxpose.xlu0.b32.cont [4/16] (narrow) %v1116_v3, 8  ;;  %v1393_v2 = vpop.eup %1392  ;;  %v2741_v3 = vld [vmem:[#allocation43_spill] sm:$0xff] }
 0x35c   :  { %v386_v14 = vmul.f32 0.6931472, %v1393_v2  ;;  %v403_v36 = vadd.f32 %v384_v19, %v2741_v3  ;;  %v1395_v57 = vpop.eup %1394 }
 0x35f   :  { %1175 = vxpose.xlu1.b32.cont [14/16] (narrow) %v1002_v54, 8  ;;  %v1085_v4 = vpop.xlane.xlu0 %1084 }
 0x360   :  { %v1119_v59 = vsub.f32 %v1085_v4, %v397_v21 }
 0x363   :  { %1176 = vxpose.xlu1.b32.cont [15/16] (narrow) %v1017_v32, 8  ;;  %v2530_v10 = vpop.xlane.xlu0 %1108 }
 0x367   :  { %1177 = vxpose.xlu1.b32.end [16/16] (narrow) %v1032_v58, 8 }
 0x369   :  { %v1088_v8 = vpop.xlane.xlu1 %1087 }
 0x36a   :  { %v1120_v9 = vsub.f32 %v1088_v8, %v398_v44 }
 0x36b   :  { %v1079_v23 = vpop.xlane.xlu0 %1078 }
 0x36c   :  { %v1117_v30 = vsub.f32 %v1079_v23, %v395_v47 }
 0x36d   :  { %v2535_v31 = vpop.xlane.xlu1 %1111 }
 0x36e   :  { %1199 = vxpose.xlu0.b32.cont [5/16] (narrow) %v1117_v30, 8 }
 0x36f   :  { %v1103_v33 = vpop.xlane.xlu0 %1102 }
 0x375   :  { %v1082_v29 = vpop.xlane.xlu1 %1081 }
 0x376   :  { %v1118_v25 = vsub.f32 %v1082_v29, %v396_v1 }
 0x378   :  { %1200 = vxpose.xlu0.b32.cont [6/16] (narrow) %v1118_v25, 8 }
 0x37c   :  { %1201 = vxpose.xlu0.b32.cont [7/16] (narrow) %v1119_v59, 8 }
 0x380   :  { %1202 = vxpose.xlu0.b32.cont [8/16] (narrow) %v1120_v9, 8 }
 0x384   :  { %1203 = vxpose.xlu0.b32.cont [9/16] (narrow) %v1121_v20, 8 }
 0x388   :  { %1204 = vxpose.xlu0.b32.cont [10/16] (narrow) %v1122_v18, 8 }
 0x38c   :  { %1205 = vxpose.xlu0.b32.cont [11/16] (narrow) %v1123_v7, 8 }
 0x38f   :  { %v1145_v45 = vpop.trf.xlu0 }
 0x390   :  { %1206 = vxpose.xlu0.b32.cont [12/16] (narrow) %v1124_v0, 8  ;;  %1161 = vst [vmem:[#allocation2] sm:$0x1] %v1145_v45 }
 0x391   :  { %1409 = shalt.err (!%p1406_p4)
}
 0x392   :  { %s1410_s21 = scalar_lea.hbm %s2598_s3, 16 }
 0x393   :  { %p1411_p5 = scmp.ne.s32.totalorder %s2598_s3, %s1410_s21  ;;  %p1414_p6 = scmp.lt.u32.totalorder %s1410_s21, %s2598_s3 }
 0x395   :  { %p1416_p7 = pnand %p1414_p6, %p1411_p5 }
 0x397   :  { %1419 = shalt.err (!%p1416_p7)
}
 0x398   :  { %1237 = dma.vmem_to_hbm [thread:$0]  %s1235_s16, 16, %s2598_s3, [#allocation3]   ;;  %v1125_v60 = vsub.f32 %v1103_v33, %v403_v36  ;;  %v1106_v28 = vpop.xlane.xlu1 %1105  ;;  %v388_v7 = vmul.f32 0.6931472, %v1395_v57  ;;  %v2742_v11 = vld [vmem:[#allocation52_spill] sm:$0xff]  ;;  %v1397_v0 = vpop.eup %1396  ;;  %v2743_v54 = vld [vmem:[#allocation45_spill] sm:$0xff] }
 0x399   :  { %v404_v6 = vadd.f32 %v386_v14, %v2742_v11  ;;  %v390_v41 = vmul.f32 0.6931472, %v1397_v0  ;;  %v2744_v50 = vld [vmem:[#allocation46_spill] sm:$0xff]  ;;  %s1469_s3 = smov [#allocation4]  }
 0x39a   :  { %1207 = vxpose.xlu0.b32.cont [13/16] (narrow) %v1125_v60, 8  ;;  %v405_v26 = vadd.f32 %v388_v7, %v2743_v54  ;;  %s1244_s1 = sshll.u32 %s1469_s3, 4  ;;  %s1245_s1 = int_to_ptr.vmem [resolvable:$true] %s1244_s1 }
 0x39b   :  { %v1126_v49 = vsub.f32 %v1106_v28, %v404_v6  ;;  %v406_v32 = vadd.f32 %v390_v41, %v2744_v50  ;;  %s1420_s28 = scalar_lea.vmem %s1245_s1, 16  ;;  %s1424_s29 = scalar_lea.vmem %s1245_s1, 32 }
 0x39c   :  { %v1127_v55 = vsub.f32 %v2530_v10, %v405_v26  ;;  %p1421_p8 = scmp.ne.s32.totalorder %s1245_s1, %s1420_s28  ;;  %p1425_p9 = scmp.lt.s32.totalorder %s1245_s1, %s1245_s1 }
 0x39d   :  { %v1128_v12 = vsub.f32 %v2535_v31, %v406_v32  ;;  %p1426_p10 = scmp.lt.s32.totalorder %s1424_s29, %s1420_s28 }
 0x39e   :  { %1208 = vxpose.xlu0.b32.cont [14/16] (narrow) %v1126_v49, 8 }
 0x39f   :  { %p1427_p11 = por %p1426_p10, %p1425_p9 }
 0x3a1   :  { %p1428_p12 = pnand %p1427_p11, %p1421_p8 }
 0x3a2   :  { %1209 = vxpose.xlu0.b32.cont [15/16] (narrow) %v1127_v55, 8 }
 0x3a6   :  { %1210 = vxpose.xlu0.b32.end [16/16] (narrow) %v1128_v12, 8 }
 0x3ab   :  { %v1178_v4 = vpop.trf.xlu1 }
 0x3ac   :  { %1194 = vst [vmem:[#allocation4] sm:$0x1] %v1178_v4 }
 0x3ad   :  { %1431 = shalt.err (!%p1428_p12)
}
 0x3ae   :  { %s1432_s7 = scalar_lea.hbm %s2599_s4, 16 }
 0x3af   :  { %p1433_p13 = scmp.ne.s32.totalorder %s2599_s4, %s1432_s7  ;;  %p1436_p0 = scmp.lt.u32.totalorder %s1432_s7, %s2599_s4 }
 0x3b1   :  { %p1438_p1 = pnand %p1436_p0, %p1433_p13 }
 0x3b3   :  { %1441 = shalt.err (!%p1438_p1)
}
 0x3b4   :  { %1247 = dma.vmem_to_hbm [thread:$0]  %s1245_s1, 16, %s2599_s4, [#allocation5]  }
 0x3b5   :  { %s1470_s14 = smov [#allocation6]  }
 0x3b6   :  { %s1254_s15 = sshll.u32 %s1470_s14, 4  ;;  %s1255_s15 = int_to_ptr.vmem [resolvable:$true] %s1254_s15 }
 0x3b7   :  { %s1442_s0 = scalar_lea.vmem %s1255_s15, 16  ;;  %s1446_s2 = scalar_lea.vmem %s1255_s15, 32 }
 0x3b8   :  { %p1443_p2 = scmp.ne.s32.totalorder %s1255_s15, %s1442_s0  ;;  %p1447_p3 = scmp.lt.s32.totalorder %s1255_s15, %s1255_s15 }
 0x3b9   :  { %p1448_p4 = scmp.lt.s32.totalorder %s1446_s2, %s1442_s0 }
 0x3bb   :  { %p1449_p5 = por %p1448_p4, %p1447_p3 }
 0x3bd   :  { %p1450_p6 = pnand %p1449_p5, %p1443_p2 }
 0x3ea   :  { %v1211_v34 = vpop.trf.xlu0 }
 0x3eb   :  { %1227 = vst [vmem:[#allocation6] sm:$0x1] %v1211_v34 }
 0x3ec   :  { %1453 = shalt.err (!%p1450_p6)
}
 0x3ed   :  { %s1454_s18 = scalar_lea.hbm %s2600_s5, 16 }
 0x3ee   :  { %p1455_p7 = scmp.ne.s32.totalorder %s2600_s5, %s1454_s18  ;;  %p1458_p8 = scmp.lt.u32.totalorder %s1454_s18, %s2600_s5 }
 0x3f0   :  { %p1460_p9 = pnand %p1458_p8, %p1455_p7 }
 0x3f2   :  { %1463 = shalt.err (!%p1460_p9)
}
 0x3f3   :  { %1257 = dma.vmem_to_hbm [thread:$0]  %s1255_s15, 16, %s2600_s5, [#allocation5]  }
 0x3f4   :  { %1464 = dma.done.wait [#allocation3], 16  }
 0x3f5   :  { %1465 = vsyncadd [#allocation3], 4294967280 }
 0x3f6   :  { %1466 = dma.done.wait [#allocation5], 32  }
 0x3f7   :  { %1467 = vsyncadd [#allocation5], 4294967264 }
 0x3f8   :  { %1267 = vsyncpa [#allocation3], 1 }
 0x3f9   :  { %1268 = vsyncpa [#allocation5], 1 }

</bundles_post_ra>
